<compile_context>
chip_gen: v7x
topology: tpu7x:2x2x1
jax: 0.10.0
libtpu: 0.0.40
codegen_flags: <defaults>
</compile_context>

<pallas_src>
import math
import numpy as np
import jax
import jax.numpy as jnp
from jax.experimental import pallas as pl
from jax.experimental.pallas import tpu as pltpu


# ---------------------------------------------------------------------------
# Pallas kernel: conv (im2col-in-kernel) + bias + ReLU for one (batch image,
# Cout tile) grid point.
# ---------------------------------------------------------------------------
def _make_conv_bias_relu_kernel(kh, kw, stride, ho, wo, cin_p, m_pad):
  taps = [(di, dj) for di in range(kh) for dj in range(kw)]
  m = ho * wo

  def kernel(x_ref, w_ref, b_ref, o_ref):
    # x_ref: (Hp, Wp, Cin_p)        padded NHWC image for this batch element
    # w_ref: (kh*kw, Cin_p, TC)     per-tap weight slabs for this Cout tile
    # b_ref: (1, TC)                f32 bias slice (lane-padded)
    # o_ref: (M_pad, TC)            lane-dense output tile
    tc = o_ref.shape[-1]
    acc = jnp.zeros((m, tc), jnp.float32)
    for t, (di, dj) in enumerate(taps):
      if stride == 1:
        xs = x_ref[di:di + ho, dj:dj + wo, :]
      else:
        # TODO(synk): stride > 1 relies on strided pl.ds window reads; only
        # stride == 1 is exercised by the self-test below.
        xs = x_ref[pl.ds(di, ho, stride=stride),
                   pl.ds(dj, wo, stride=stride), :]
      acc = acc + jnp.dot(xs.reshape(m, cin_p), w_ref[t],
                          preferred_element_type=jnp.float32)
    vals = jnp.maximum(acc + b_ref[...], 0.0)
    if m_pad != m:  # static at trace time; pad rows are sliced off outside
      vals = jnp.pad(vals, ((0, m_pad - m), (0, 0)))
    o_ref[...] = vals.astype(o_ref.dtype)

  return kernel


# ---------------------------------------------------------------------------
# Wrapper: accepts / returns NCHW (matches the PyTorch module exactly).
# ---------------------------------------------------------------------------
def conv_layer2d_forward(x_nchw, w_oihw, bias, *, stride, padding,
                         compute_dtype=jnp.float32):
  n, cin, h, w_ = x_nchw.shape
  cout, _, kh, kw = w_oihw.shape
  ho = (h + 2 * padding - kh) // stride + 1
  wo = (w_ + 2 * padding - kw) // stride + 1
  hp, wp = h + 2 * padding, w_ + 2 * padding

  # Alignment padding: Cin -> multiple of 8 (sublanes), Cout -> multiple of
  # 128 (lanes), M = Ho*Wo -> multiple of 8 (sublanes).  Zero padding, so
  # results are bit-identical after slicing.
  cin_p = ((cin + 7) // 8) * 8
  cout_p = ((cout + 127) // 128) * 128
  m = ho * wo
  m_pad = ((m + 7) // 8) * 8

  # Cout tiling: 128-lane tiles keep every output store full-lane and bound
  # the per-step weight slab in VMEM for large Cout.
  tc = 128
  n_ct = cout_p // tc

  # NCHW -> NHWC (channels on the 128-lane axis) + spatial zero padding.
  x = jnp.transpose(x_nchw, (0, 2, 3, 1))
  xp = jnp.pad(x, ((0, 0), (padding, padding), (padding, padding),
                   (0, cin_p - cin))).astype(compute_dtype)

  # Weights: OIHW -> (kh*kw, Cin_p, Cout_p) per-tap slabs.
  w_taps = jnp.transpose(w_oihw, (2, 3, 1, 0)).reshape(kh * kw, cin, cout)
  w_taps = jnp.pad(w_taps, ((0, 0), (0, cin_p - cin),
                            (0, cout_p - cout))).astype(compute_dtype)
  b2 = jnp.pad(bias.astype(jnp.float32), (0, cout_p - cout)).reshape(1, cout_p)

  # TODO(synk): for very large Ho*Wo, additionally tile the H axis of the
  # padded image (overlapping row windows) to bound the per-step VMEM block.
  out = pl.pallas_call(
      _make_conv_bias_relu_kernel(kh, kw, stride, ho, wo, cin_p, m_pad),
      out_shape=jax.ShapeDtypeStruct((n, m_pad, cout_p), jnp.float32),
      grid=(n, n_ct),
      in_specs=[
          # Image block depends only on the batch index -> stays resident
          # across the inner Cout-tile axis.
          pl.BlockSpec((None, hp, wp, cin_p), lambda i, j: (i, 0, 0, 0)),
          pl.BlockSpec((kh * kw, cin_p, tc), lambda i, j: (0, 0, j)),
          pl.BlockSpec((1, tc), lambda i, j: (0, j)),
      ],
      out_specs=pl.BlockSpec((None, m_pad, tc), lambda i, j: (i, 0, j)),
      compiler_params=pltpu.CompilerParams(
          dimension_semantics=("parallel", "parallel")),
  )(xp, w_taps, b2)

  out = out[:, :m, :cout].reshape(n, ho, wo, cout)
  return jnp.transpose(out, (0, 3, 1, 2))  # back to NCHW


# ---------------------------------------------------------------------------
# Pure-JAX reference (correctness check only).
# ---------------------------------------------------------------------------
def _ref_forward(x_nchw, w_oihw, bias, stride, padding):
  y = jax.lax.conv_general_dilated(
      x_nchw, w_oihw,
      window_strides=(stride, stride),
      padding=((padding, padding), (padding, padding)),
      dimension_numbers=('NCHW', 'OIHW', 'NCHW'))
  y = y + bias.reshape(1, -1, 1, 1)
  return jnp.maximum(y, 0.0)


def _run_case(key, n, cin, h, w_sp, cout, ksz, stride, padding):
  kx, kw_, kb = jax.random.split(key, 3)
  x = jax.random.normal(kx, (n, cin, h, w_sp), dtype=jnp.float32)
  # Kaiming-normal init (fan_in, ReLU gain), deterministic.
  fan_in = cin * ksz * ksz
  w = jax.random.normal(kw_, (cout, cin, ksz, ksz), jnp.float32) * math.sqrt(
      2.0 / fan_in)
  b = 0.1 * jax.random.normal(kb, (cout,), jnp.float32)

  ref = jax.block_until_ready(_ref_forward(x, w, b, stride, padding))

  # f32 compute path (tight check).
  fwd_f32 = jax.jit(lambda xx: conv_layer2d_forward(
      xx, w, b, stride=stride, padding=padding, compute_dtype=jnp.float32))
  out_f32 = jax.block_until_ready(fwd_f32(x))
  assert out_f32.shape == ref.shape, (out_f32.shape, ref.shape)
  np.testing.assert_allclose(np.asarray(out_f32), np.asarray(ref),
                             rtol=1e-4, atol=1e-4)

  # bf16 compute path (throughput option: bf16 MXU, f32 accumulate/epilogue).
  fwd_bf16 = jax.jit(lambda xx: conv_layer2d_forward(
      xx, w, b, stride=stride, padding=padding, compute_dtype=jnp.bfloat16))
  out_bf16 = jax.block_until_ready(fwd_bf16(x))
  np.testing.assert_allclose(np.asarray(out_bf16), np.asarray(ref),
                             rtol=2e-2, atol=2e-2)


# ---------------------------------------------------------------------------
if __name__ == "__main__":
  key = jax.random.PRNGKey(0)
  k1, k2 = jax.random.split(key)

  # Module parameters: ConvLayer2D(in_ch=4, out_ch=32, k_size=3, stride=1, padding=1)
  _run_case(k1, n=2, cin=4, h=16, w_sp=16, cout=32, ksz=3, stride=1, padding=1)

  # Non-aligned channel counts (exercise Cin/Cout zero-padding paths).
  _run_case(k2, n=2, cin=3, h=8, w_sp=8, cout=8, ksz=3, stride=1, padding=1)

  print("KERNEL_OK")
</pallas_src>

<mosaic_0001>
module attributes {stable_mosaic.version = 11 : i64} {
  func.func @kernel(%arg0: i32, %arg1: i32, %arg2: memref<1x18x18x8xf32, #tpu.memory_space<vmem>>, %arg3: memref<9x8x128xf32, #tpu.memory_space<vmem>>, %arg4: memref<1x128xf32, #tpu.memory_space<vmem>>, %arg5: memref<1x256x128xf32, #tpu.memory_space<vmem>>) attributes {dimension_semantics = [#tpu.dimension_semantics<parallel>, #tpu.dimension_semantics<parallel>], iteration_bounds = array<i64: 2, 1>, scalar_prefetch = 0 : i64, scratch_operands = 0 : i64, tpu.core_type = #tpu.core_type<tc>, window_params = [{transform_indices = @transform_0, window_bounds = array<i64: 1, 18, 18, 8>}, {transform_indices = @transform_1, window_bounds = array<i64: 9, 8, 128>}, {transform_indices = @transform_2, window_bounds = array<i64: 1, 128>}, {transform_indices = @transform_3, window_bounds = array<i64: 1, 256, 128>}]} {
    %cst = arith.constant 0.000000e+00 : f32
    %0 = vector.broadcast %cst : f32 to vector<256x128xf32>
    %c0 = arith.constant 0 : index
    %c0_0 = arith.constant 0 : index
    %c0_1 = arith.constant 0 : index
    %c0_2 = arith.constant 0 : index
    %1 = vector.load %arg2[%c0, %c0_0, %c0_1, %c0_2] : memref<1x18x18x8xf32, #tpu.memory_space<vmem>>, vector<1x16x16x8xf32>
    %2 = vector.shape_cast %1 : vector<1x16x16x8xf32> to vector<16x16x8xf32>
    %3 = vector.shape_cast %2 : vector<16x16x8xf32> to vector<256x8xf32>
    %c0_3 = arith.constant 0 : index
    %c0_4 = arith.constant 0 : index
    %c0_5 = arith.constant 0 : index
    %4 = vector.load %arg3[%c0_3, %c0_4, %c0_5] : memref<9x8x128xf32, #tpu.memory_space<vmem>>, vector<1x8x128xf32>
    %5 = vector.shape_cast %4 : vector<1x8x128xf32> to vector<8x128xf32>
    %cst_6 = arith.constant dense<0.000000e+00> : vector<256x128xf32>
    %6 = tpu.matmul %3, %5, %cst_6 {dimension_numbers = #tpu.dot_dimension_numbers<[1], [0], [0], [1], [0, 0, 1, 1], [], []>} : vector<256x8xf32>, vector<8x128xf32>, vector<256x128xf32> -> vector<256x128xf32>
    %7 = arith.addf %0, %6 : vector<256x128xf32>
    %c0_7 = arith.constant 0 : index
    %c0_8 = arith.constant 0 : index
    %c1 = arith.constant 1 : index
    %c0_9 = arith.constant 0 : index
    %8 = vector.load %arg2[%c0_7, %c0_8, %c1, %c0_9] : memref<1x18x18x8xf32, #tpu.memory_space<vmem>>, vector<1x16x16x8xf32>
    %9 = vector.shape_cast %8 : vector<1x16x16x8xf32> to vector<16x16x8xf32>
    %10 = vector.shape_cast %9 : vector<16x16x8xf32> to vector<256x8xf32>
    %c1_10 = arith.constant 1 : index
    %c0_11 = arith.constant 0 : index
    %c0_12 = arith.constant 0 : index
    %11 = vector.load %arg3[%c1_10, %c0_11, %c0_12] : memref<9x8x128xf32, #tpu.memory_space<vmem>>, vector<1x8x128xf32>
    %12 = vector.shape_cast %11 : vector<1x8x128xf32> to vector<8x128xf32>
    %cst_13 = arith.constant dense<0.000000e+00> : vector<256x128xf32>
    %13 = tpu.matmul %10, %12, %cst_13 {dimension_numbers = #tpu.dot_dimension_numbers<[1], [0], [0], [1], [0, 0, 1, 1], [], []>} : vector<256x8xf32>, vector<8x128xf32>, vector<256x128xf32> -> vector<256x128xf32>
    %14 = arith.addf %7, %13 : vector<256x128xf32>
    %c0_14 = arith.constant 0 : index
    %c0_15 = arith.constant 0 : index
    %c2 = arith.constant 2 : index
    %c0_16 = arith.constant 0 : index
    %15 = vector.load %arg2[%c0_14, %c0_15, %c2, %c0_16] : memref<1x18x18x8xf32, #tpu.memory_space<vmem>>, vector<1x16x16x8xf32>
    %16 = vector.shape_cast %15 : vector<1x16x16x8xf32> to vector<16x16x8xf32>
    %17 = vector.shape_cast %16 : vector<16x16x8xf32> to vector<256x8xf32>
    %c2_17 = arith.constant 2 : index
    %c0_18 = arith.constant 0 : index
    %c0_19 = arith.constant 0 : index
    %18 = vector.load %arg3[%c2_17, %c0_18, %c0_19] : memref<9x8x128xf32, #tpu.memory_space<vmem>>, vector<1x8x128xf32>
    %19 = vector.shape_cast %18 : vector<1x8x128xf32> to vector<8x128xf32>
    %cst_20 = arith.constant dense<0.000000e+00> : vector<256x128xf32>
    %20 = tpu.matmul %17, %19, %cst_20 {dimension_numbers = #tpu.dot_dimension_numbers<[1], [0], [0], [1], [0, 0, 1, 1], [], []>} : vector<256x8xf32>, vector<8x128xf32>, vector<256x128xf32> -> vector<256x128xf32>
    %21 = arith.addf %14, %20 : vector<256x128xf32>
    %c0_21 = arith.constant 0 : index
    %c1_22 = arith.constant 1 : index
    %c0_23 = arith.constant 0 : index
    %c0_24 = arith.constant 0 : index
    %22 = vector.load %arg2[%c0_21, %c1_22, %c0_23, %c0_24] : memref<1x18x18x8xf32, #tpu.memory_space<vmem>>, vector<1x16x16x8xf32>
    %23 = vector.shape_cast %22 : vector<1x16x16x8xf32> to vector<16x16x8xf32>
    %24 = vector.shape_cast %23 : vector<16x16x8xf32> to vector<256x8xf32>
    %c3 = arith.constant 3 : index
    %c0_25 = arith.constant 0 : index
    %c0_26 = arith.constant 0 : index
    %25 = vector.load %arg3[%c3, %c0_25, %c0_26] : memref<9x8x128xf32, #tpu.memory_space<vmem>>, vector<1x8x128xf32>
    %26 = vector.shape_cast %25 : vector<1x8x128xf32> to vector<8x128xf32>
    %cst_27 = arith.constant dense<0.000000e+00> : vector<256x128xf32>
    %27 = tpu.matmul %24, %26, %cst_27 {dimension_numbers = #tpu.dot_dimension_numbers<[1], [0], [0], [1], [0, 0, 1, 1], [], []>} : vector<256x8xf32>, vector<8x128xf32>, vector<256x128xf32> -> vector<256x128xf32>
    %28 = arith.addf %21, %27 : vector<256x128xf32>
    %c0_28 = arith.constant 0 : index
    %c1_29 = arith.constant 1 : index
    %c1_30 = arith.constant 1 : index
    %c0_31 = arith.constant 0 : index
    %29 = vector.load %arg2[%c0_28, %c1_29, %c1_30, %c0_31] : memref<1x18x18x8xf32, #tpu.memory_space<vmem>>, vector<1x16x16x8xf32>
    %30 = vector.shape_cast %29 : vector<1x16x16x8xf32> to vector<16x16x8xf32>
    %31 = vector.shape_cast %30 : vector<16x16x8xf32> to vector<256x8xf32>
    %c4 = arith.constant 4 : index
    %c0_32 = arith.constant 0 : index
    %c0_33 = arith.constant 0 : index
    %32 = vector.load %arg3[%c4, %c0_32, %c0_33] : memref<9x8x128xf32, #tpu.memory_space<vmem>>, vector<1x8x128xf32>
    %33 = vector.shape_cast %32 : vector<1x8x128xf32> to vector<8x128xf32>
    %cst_34 = arith.constant dense<0.000000e+00> : vector<256x128xf32>
    %34 = tpu.matmul %31, %33, %cst_34 {dimension_numbers = #tpu.dot_dimension_numbers<[1], [0], [0], [1], [0, 0, 1, 1], [], []>} : vector<256x8xf32>, vector<8x128xf32>, vector<256x128xf32> -> vector<256x128xf32>
    %35 = arith.addf %28, %34 : vector<256x128xf32>
    %c0_35 = arith.constant 0 : index
    %c1_36 = arith.constant 1 : index
    %c2_37 = arith.constant 2 : index
    %c0_38 = arith.constant 0 : index
    %36 = vector.load %arg2[%c0_35, %c1_36, %c2_37, %c0_38] : memref<1x18x18x8xf32, #tpu.memory_space<vmem>>, vector<1x16x16x8xf32>
    %37 = vector.shape_cast %36 : vector<1x16x16x8xf32> to vector<16x16x8xf32>
    %38 = vector.shape_cast %37 : vector<16x16x8xf32> to vector<256x8xf32>
    %c5 = arith.constant 5 : index
    %c0_39 = arith.constant 0 : index
    %c0_40 = arith.constant 0 : index
    %39 = vector.load %arg3[%c5, %c0_39, %c0_40] : memref<9x8x128xf32, #tpu.memory_space<vmem>>, vector<1x8x128xf32>
    %40 = vector.shape_cast %39 : vector<1x8x128xf32> to vector<8x128xf32>
    %cst_41 = arith.constant dense<0.000000e+00> : vector<256x128xf32>
    %41 = tpu.matmul %38, %40, %cst_41 {dimension_numbers = #tpu.dot_dimension_numbers<[1], [0], [0], [1], [0, 0, 1, 1], [], []>} : vector<256x8xf32>, vector<8x128xf32>, vector<256x128xf32> -> vector<256x128xf32>
    %42 = arith.addf %35, %41 : vector<256x128xf32>
    %c0_42 = arith.constant 0 : index
    %c2_43 = arith.constant 2 : index
    %c0_44 = arith.constant 0 : index
    %c0_45 = arith.constant 0 : index
    %43 = vector.load %arg2[%c0_42, %c2_43, %c0_44, %c0_45] : memref<1x18x18x8xf32, #tpu.memory_space<vmem>>, vector<1x16x16x8xf32>
    %44 = vector.shape_cast %43 : vector<1x16x16x8xf32> to vector<16x16x8xf32>
    %45 = vector.shape_cast %44 : vector<16x16x8xf32> to vector<256x8xf32>
    %c6 = arith.constant 6 : index
    %c0_46 = arith.constant 0 : index
    %c0_47 = arith.constant 0 : index
    %46 = vector.load %arg3[%c6, %c0_46, %c0_47] : memref<9x8x128xf32, #tpu.memory_space<vmem>>, vector<1x8x128xf32>
    %47 = vector.shape_cast %46 : vector<1x8x128xf32> to vector<8x128xf32>
    %cst_48 = arith.constant dense<0.000000e+00> : vector<256x128xf32>
    %48 = tpu.matmul %45, %47, %cst_48 {dimension_numbers = #tpu.dot_dimension_numbers<[1], [0], [0], [1], [0, 0, 1, 1], [], []>} : vector<256x8xf32>, vector<8x128xf32>, vector<256x128xf32> -> vector<256x128xf32>
    %49 = arith.addf %42, %48 : vector<256x128xf32>
    %c0_49 = arith.constant 0 : index
    %c2_50 = arith.constant 2 : index
    %c1_51 = arith.constant 1 : index
    %c0_52 = arith.constant 0 : index
    %50 = vector.load %arg2[%c0_49, %c2_50, %c1_51, %c0_52] : memref<1x18x18x8xf32, #tpu.memory_space<vmem>>, vector<1x16x16x8xf32>
    %51 = vector.shape_cast %50 : vector<1x16x16x8xf32> to vector<16x16x8xf32>
    %52 = vector.shape_cast %51 : vector<16x16x8xf32> to vector<256x8xf32>
    %c7 = arith.constant 7 : index
    %c0_53 = arith.constant 0 : index
    %c0_54 = arith.constant 0 : index
    %53 = vector.load %arg3[%c7, %c0_53, %c0_54] : memref<9x8x128xf32, #tpu.memory_space<vmem>>, vector<1x8x128xf32>
    %54 = vector.shape_cast %53 : vector<1x8x128xf32> to vector<8x128xf32>
    %cst_55 = arith.constant dense<0.000000e+00> : vector<256x128xf32>
    %55 = tpu.matmul %52, %54, %cst_55 {dimension_numbers = #tpu.dot_dimension_numbers<[1], [0], [0], [1], [0, 0, 1, 1], [], []>} : vector<256x8xf32>, vector<8x128xf32>, vector<256x128xf32> -> vector<256x128xf32>
    %56 = arith.addf %49, %55 : vector<256x128xf32>
    %c0_56 = arith.constant 0 : index
    %c2_57 = arith.constant 2 : index
    %c2_58 = arith.constant 2 : index
    %c0_59 = arith.constant 0 : index
    %57 = vector.load %arg2[%c0_56, %c2_57, %c2_58, %c0_59] : memref<1x18x18x8xf32, #tpu.memory_space<vmem>>, vector<1x16x16x8xf32>
    %58 = vector.shape_cast %57 : vector<1x16x16x8xf32> to vector<16x16x8xf32>
    %59 = vector.shape_cast %58 : vector<16x16x8xf32> to vector<256x8xf32>
    %c8 = arith.constant 8 : index
    %c0_60 = arith.constant 0 : index
    %c0_61 = arith.constant 0 : index
    %60 = vector.load %arg3[%c8, %c0_60, %c0_61] : memref<9x8x128xf32, #tpu.memory_space<vmem>>, vector<1x8x128xf32>
    %61 = vector.shape_cast %60 : vector<1x8x128xf32> to vector<8x128xf32>
    %cst_62 = arith.constant dense<0.000000e+00> : vector<256x128xf32>
    %62 = tpu.matmul %59, %61, %cst_62 {dimension_numbers = #tpu.dot_dimension_numbers<[1], [0], [0], [1], [0, 0, 1, 1], [], []>} : vector<256x8xf32>, vector<8x128xf32>, vector<256x128xf32> -> vector<256x128xf32>
    %63 = arith.addf %56, %62 : vector<256x128xf32>
    %c0_63 = arith.constant 0 : index
    %c0_64 = arith.constant 0 : index
    %64 = vector.load %arg4[%c0_63, %c0_64] : memref<1x128xf32, #tpu.memory_space<vmem>>, vector<1x128xf32>
    %65 = vector.broadcast %64 : vector<1x128xf32> to vector<256x128xf32>
    %66 = arith.addf %63, %65 : vector<256x128xf32>
    %cst_65 = arith.constant 0.000000e+00 : f32
    %67 = vector.broadcast %cst_65 : f32 to vector<256x128xf32>
    %68 = arith.maximumf %66, %67 : vector<256x128xf32>
    %c0_66 = arith.constant 0 : index
    %c0_67 = arith.constant 0 : index
    %c0_68 = arith.constant 0 : index
    %69 = vector.load %arg5[%c0_66, %c0_67, %c0_68] : memref<1x256x128xf32, #tpu.memory_space<vmem>>, vector<1x256x128xf32>
    %70 = vector.shape_cast %69 : vector<1x256x128xf32> to vector<256x128xf32>
    %71 = vector.shape_cast %68 : vector<256x128xf32> to vector<1x256x128xf32>
    tpu.vector_store %arg5[%c0_66, %c0_67, %c0_68], %71 {strides = array<i32>} : memref<1x256x128xf32, #tpu.memory_space<vmem>>, vector<1x256x128xf32>,
    return
  }
  func.func @transform_0(%arg0: i32, %arg1: i32) -> (i32, i32, i32, i32) {
    %c0_i32 = arith.constant 0 : i32
    %c0_i32_0 = arith.constant 0 : i32
    %c0_i32_1 = arith.constant 0 : i32
    %c0_i32_2 = arith.constant 0 : i32
    return %arg0, %c0_i32, %c0_i32_0, %c0_i32_1 : i32, i32, i32, i32
  }
  func.func @transform_1(%arg0: i32, %arg1: i32) -> (i32, i32, i32) {
    %c0_i32 = arith.constant 0 : i32
    %c0_i32_0 = arith.constant 0 : i32
    %c0_i32_1 = arith.constant 0 : i32
    return %c0_i32, %c0_i32_0, %arg1 : i32, i32, i32
  }
  func.func @transform_2(%arg0: i32, %arg1: i32) -> (i32, i32) {
    %c0_i32 = arith.constant 0 : i32
    %c0_i32_0 = arith.constant 0 : i32
    return %c0_i32, %arg1 : i32, i32
  }
  func.func @transform_3(%arg0: i32, %arg1: i32) -> (i32, i32, i32) {
    %c0_i32 = arith.constant 0 : i32
    %c0_i32_0 = arith.constant 0 : i32
    return %arg0, %c0_i32, %arg1 : i32, i32, i32
  }
}

</mosaic_0001>

<bundles_post_ra>
// kernel: _lambda_.1
= control target key start
LH: loop header
LB: loop body
LE: loop exit
PB: predicated region body
PF: predicated region fallthrough
CT: control target
= control target key end

     0   :  { %8 = vsyncpa [#allocation3], 0  ;;  %s6632_s0 = inlined_call_operand.vmem [shape: f32[2,18,18,8], index: 0, kind: input, shape index: {}]   ;;  %s6633_s1 = inlined_call_operand.vmem [shape: f32[9,8,128], index: 1, kind: input, shape index: {}]   ;;  %s6634_s2 = inlined_call_operand.vmem [shape: f32[1,128], index: 2, kind: input, shape index: {}]   ;;  %s6635_s3 = inlined_call_operand.hbm [shape: f32[2,256,128], index: 3, kind: output, shape index: {}]  }
   0x1   :  { %10 = vsyncpa [#allocation3 + $0x1], 0  ;;  %s5522_s12 = smov 0   ;;  %s5524_s13 = smov 0  }
   0x2   :  { %s5526_s14 = smov 0   ;;  %s5528_s15 = smov 0  }
   0x3   :  { %s5530_s16 = smov 0   ;;  %s5532_s17 = smov 0  }
   0x4 LB: > { %s3852_s18 = sadd.s32 4294967295, %s5497_s17   ;;  %s3853_s19 = sadd.s32 4294967294, %s5497_s17   ;;  %s5497_s17 = sphi %s5532_s17, %s16_s17   ;;  %s5493_s16 = sphi %s5530_s16, %s6751_s16   ;;  %s5489_s15 = sphi %s5528_s15, %s6750_s15   ;;  %s5485_s14 = sphi %s5526_s14, %s6749_s14   ;;  %s5481_s13 = sphi %s5524_s13, %s6748_s13   ;;  %s5477_s12 = sphi %s5522_s12, %s6747_s12  }
   0x5   : > { %s28_s20 = sadd.s32 1, %s5493_s16  ;;  %s115_s21 = sadd.s32 1, %s5485_s14 }
   0x6   : > { %p30_p0 = scmp.ge.s32.totalorder %s28_s20, 2  ;;  %p125_p1 = scmp.ne.s32.totalorder %s5485_s14, %s5481_s13 }
   0x7   : > { %p126_p2 = scmp.eq.s32.totalorder %s3852_s18, 1  ;;  %p131_p3 = scmp.ne.s32.totalorder %s5481_s13, %s5477_s12 }
   0x8   : > { %s6753_s20 = smov (%p30_p0, %s28_s20), 0  ;;  %p132_p5 = scmp.eq.s32.totalorder %s3853_s19, 1 }
   0x9   : > { %p5562_p4 = por %p126_p2, %p125_p1  ;;  %s110_s23 = ssub.s32 %s5493_s16, %s6753_s20 }
   0xa   : > { %p3858_p6 = scmp.ge.s32.totalorder %s5497_s17, 1  ;;  %p113_p7 = scmp.eq.s32.totalorder %s110_s23, 0 }
   0xb   : > { %p5569_p8 = por %p132_p5, %p131_p3  ;;  %p171_p9 = scmp.lt.s32.totalorder %s5497_s17, 3 }
   0xc   : > { %s5575_s25 = scalar_select %p113_p7, %s5485_s14, %s115_s21  }
   0xd   : > { %p172_p10 = pnand %p3858_p6, %p171_p9 }
   0xf   : > { %175 = sbr.rel (%p172_p10) target bundleno = 549 (0x225), region = 32 }
  0x16   : > { %v3861_v0 = vld [vmem:[%s6633_s1 + $0x8] sm:$0xff]  ;;  %v5583_v1 = vld [vmem:[%s6633_s1 + $0x20] sm:$0xff]  ;;  %p202_p11 = scmp.lt.s32.totalorder %s5489_s15, 1  ;;  %vm281_vm0 = vcmask 64512   ;;  %v4186_v9 = vld [vmem:[%s6633_s1 + $0x30] sm:$0xff]  ;;  %s199_s5 = sand.u32 1, %s5481_s13  }
  0x17   : > { %v246_v2 = vld [vmem:[%s6633_s1] sm:$0xff]  ;;  %4653 = vmatprep.subr.mxu1 %v3861_v0  ;;  %4853 = vmatprep.subr.mxu0 %v5583_v1  ;;  %v4121_v3 = vld [vmem:[%s6633_s1 + $0x28] sm:$0xff]  ;;  %v5617_v10 = vld [vmem:[%s6633_s1 + $0x10] sm:$0xff]  ;;  %s4355_s10 = sshll.u32 %s5489_s15, 12  ;;  %s5499_s26 = smov [#allocation2]  }
  0x18   : > { %4654 = vmatpush3.msra.mxu1 %v3861_v0  ;;  %4854 = vmatpush3.msra.mxu0 %v5583_v1  ;;  %s203_s7 = scalar_select %p202_p11, %s5489_s15, 1  ;;  %v5732_v28 = vld [vmem:[%s6633_s1 + $0x38] sm:$0xff] }
  0x19   : > { %4703 = vmatprep.subr.mxu1 %v246_v2  ;;  %4903 = vmatprep.subr.mxu0 %v4121_v3  ;;  %v5893_v61 = vld [vmem:[%s6633_s1 + $0x18] sm:$0xff]  ;;  %s6578_s21 = scalar_lea.hbm %s6635_s3, %s4355_s10  ;;  %s6586_s15 = scalar_lea.sflag [#allocation3], %s199_s5 }
  0x1a   : > { %s5361_s8 = smul.u32 432, %s203_s7  ;;  %s5423_s27 = sshll.u32 %s5499_s26, 4  ;;  %s5424_s27 = int_to_ptr.vmem [resolvable:$false] %s5423_s27 }
  0x1b   : > { %s5425_s28 = scalar_lea.vmem %s5424_s27, 8192 }
  0x1c   : > { %s5598_s11 = scalar_lea.vmem %s6632_s0, %s5361_s8  ;;  %s3859_s8 = sshll.u32 %s199_s5, 8 }
  0x1d   : > { %v247_v4 = vld [vmem:[%s5598_s11 + $0x1] sm:$0xff]  ;;  %v4024_v5 = vld [vmem:[%s5598_s11 + $0x19] sm:$0xff]  ;;  %v248_v6 = vld [vmem:[%s5598_s11 + $0x9] sm:$0xff]  ;;  %s6507_s9 = scalar_lea.vmem [#allocation2], %s3859_s8 }
  0x1e   : > { %4655 = vmatprep.mubr.msk.f32.mxu1 %vm281_vm0, %v247_v4  ;;  %4855 = vmatprep.mubr.msk.f32.mxu0 %vm281_vm0, %v4024_v5  ;;  %v4025_v7 = vld [vmem:[%s5598_s11 + $0x21] sm:$0xff]  ;;  %v5607_v8 = vld [vmem:[%s5598_s11 + $0x31] sm:$0xff]  ;;  %v5620_v11 = vld [vmem:[%s5598_s11 + $0x39] sm:$0xff] }
  0x1f   : > { %4656 = vmatmul.mubr.msk.f32.vlgmr.msra.gmra.mrb[0].mxu1 %vm281_vm0, %v248_v6  ;;  %4856 = vmatmul.mubr.msk.f32.vlgmr.msra.gmra.mrb[0].mxu0 %vm281_vm0, %v4025_v7  ;;  %v5626_v12 = vld [vmem:[%s5598_s11 + $0x49] sm:$0xff]  ;;  %v5637_v13 = vld [vmem:[%s5598_s11 + $0x51] sm:$0xff]  ;;  %v5640_v14 = vld [vmem:[%s5598_s11 + $0x61] sm:$0xff] }
  0x20   : > { %4704 = vmatpush3.msra.mxu1 %v246_v2  ;;  %4904 = vmatpush3.msra.mxu0 %v4121_v3  ;;  %v5651_v15 = vld [vmem:[%s5598_s11 + $0x69] sm:$0xff]  ;;  %v5654_v16 = vld [vmem:[%s5598_s11 + $0x79] sm:$0xff]  ;;  %v5665_v17 = vld [vmem:[%s5598_s11 + $0x81] sm:$0xff] }
  0x21   : > { %4658 = vmatprep.mubr.msk.f32.mxu1 %vm281_vm0, %v4024_v5  ;;  %4858 = vmatprep.mubr.msk.f32.mxu0 %vm281_vm0, %v5607_v8  ;;  %v5668_v18 = vld [vmem:[%s5598_s11 + $0x91] sm:$0xff]  ;;  %v5679_v19 = vld [vmem:[%s5598_s11 + $0x99] sm:$0xff]  ;;  %v5682_v20 = vld [vmem:[%s5598_s11 + $0xa9] sm:$0xff] }
  0x22   : > { %4953 = vmatprep.subr.mxu0 %v4186_v9  ;;  %4753 = vmatprep.subr.mxu1 %v5617_v10  ;;  %v5693_v21 = vld [vmem:[%s5598_s11 + $0xb1] sm:$0xff]  ;;  %v5696_v22 = vld [vmem:[%s5598_s11 + $0xc1] sm:$0xff]  ;;  %v5707_v23 = vld [vmem:[%s5598_s11 + $0xc9] sm:$0xff] }
  0x23   : > { %4659 = vmatmul.mubr.msk.f32.gmra.mrb[2].mxu1 %vm281_vm0, %v4025_v7  ;;  %4859 = vmatmul.mubr.msk.f32.gmra.mrb[2].mxu0 %vm281_vm0, %v5620_v11  ;;  %v5710_v24 = vld [vmem:[%s5598_s11 + $0x1a] sm:$0xff]  ;;  %v5721_v25 = vld [vmem:[%s5598_s11 + $0x22] sm:$0xff]  ;;  %v5727_v27 = vld [vmem:[%s5598_s11 + $0x32] sm:$0xff] }
  0x24   : > { %4661 = vmatprep.mubr.msk.f32.mxu1 %vm281_vm0, %v5607_v8  ;;  %4861 = vmatprep.mubr.msk.f32.mxu0 %vm281_vm0, %v5626_v12  ;;  %v5724_v26 = vld [vmem:[%s5598_s11 + $0xd9] sm:$0xff]  ;;  %v5741_v29 = vld [vmem:[%s5598_s11 + $0xe1] sm:$0xff]  ;;  %v5749_v31 = vld [vmem:[%s5598_s11 + $0xf1] sm:$0xff] }
  0x25   : > { %6683 = vst [vmem:[#allocation5_spill] sm:$0xff] %v5741_v29  ;;  %v5744_v30 = vld [vmem:[%s5598_s11 + $0x3a] sm:$0xff]  ;;  %6684 = vst [vmem:[#allocation6_spill] sm:$0xff] %v5749_v31  ;;  %v5752_v32 = vld [vmem:[%s5598_s11 + $0x4a] sm:$0xff] }
  0x26   : > { %v5764_v33 = vld [vmem:[%s5598_s11 + $0xf9] sm:$0xff]  ;;  %v5770_v35 = vld [vmem:[%s5598_s11 + $0x109] sm:$0xff]  ;;  %v5784_v37 = vld [vmem:[%s5598_s11 + $0x111] sm:$0xff] }
  0x27   : > { %4662 = vmatmul.mubr.msk.f32.gmra.mrb[4].mxu1 %vm281_vm0, %v5620_v11  ;;  %4862 = vmatmul.mubr.msk.f32.gmra.mrb[4].mxu0 %vm281_vm0, %v5637_v13  ;;  %6685 = vst [vmem:[#allocation7_spill] sm:$0xff] %v5764_v33  ;;  %v5767_v34 = vld [vmem:[%s5598_s11 + $0x52] sm:$0xff]  ;;  %6686 = vst [vmem:[#allocation8_spill] sm:$0xff] %v5770_v35  ;;  %v5773_v36 = vld [vmem:[%s5598_s11 + $0x62] sm:$0xff] }
  0x28   : > { %4664 = vmatprep.mubr.msk.f32.mxu1 %vm281_vm0, %v5626_v12  ;;  %4864 = vmatprep.mubr.msk.f32.mxu0 %vm281_vm0, %v5640_v14  ;;  %6687 = vst [vmem:[#allocation9_spill] sm:$0xff] %v5784_v37  ;;  %v5787_v38 = vld [vmem:[%s5598_s11 + $0x6a] sm:$0xff]  ;;  %v5790_v39 = vld [vmem:[%s5598_s11 + $0x121] sm:$0xff]  ;;  %v5810_v43 = vld [vmem:[%s5598_s11 + $0x139] sm:$0xff] }
  0x29   : > { %6688 = vst [vmem:[#allocation10_spill] sm:$0xff] %v5790_v39  ;;  %v5793_v40 = vld [vmem:[%s5598_s11 + $0x7a] sm:$0xff]  ;;  %v5804_v41 = vld [vmem:[%s5598_s11 + $0x129] sm:$0xff]  ;;  %6690 = vst [vmem:[#allocation12_spill] sm:$0xff] %v5810_v43 }
  0x2a   : > { %6689 = vst [vmem:[#allocation11_spill] sm:$0xff] %v5804_v41  ;;  %v5807_v42 = vld [vmem:[%s5598_s11 + $0x82] sm:$0xff]  ;;  %v5813_v44 = vld [vmem:[%s5598_s11 + $0x92] sm:$0xff]  ;;  %v5827_v46 = vld [vmem:[%s5598_s11 + $0x9a] sm:$0xff] }
  0x2b   : > { %4665 = vmatmul.mubr.msk.f32.gmra.mrb[6].mxu1 %vm281_vm0, %v5637_v13  ;;  %4865 = vmatmul.mubr.msk.f32.gmra.mrb[6].mxu0 %vm281_vm0, %v5651_v15  ;;  %v5824_v45 = vld [vmem:[%s5598_s11 + $0x141] sm:$0xff]  ;;  %v5830_v47 = vld [vmem:[%s5598_s11 + $0x151] sm:$0xff]  ;;  %v5844_v49 = vld [vmem:[%s5598_s11 + $0x159] sm:$0xff] }
  0x2c   : > { %4667 = vmatprep.mubr.msk.f32.mxu1 %vm281_vm0, %v5640_v14  ;;  %4867 = vmatprep.mubr.msk.f32.mxu0 %vm281_vm0, %v5654_v16  ;;  %6691 = vst [vmem:[#allocation13_spill] sm:$0xff] %v5824_v45  ;;  %6692 = vst [vmem:[#allocation14_spill] sm:$0xff] %v5830_v47  ;;  %v5833_v48 = vld [vmem:[%s5598_s11 + $0xaa] sm:$0xff]  ;;  %v5847_v50 = vld [vmem:[%s5598_s11 + $0xb2] sm:$0xff] }
  0x2d   : > { %6693 = vst [vmem:[#allocation15_spill] sm:$0xff] %v5844_v49  ;;  %v5850_v51 = vld [vmem:[%s5598_s11 + $0x169] sm:$0xff]  ;;  %v5864_v53 = vld [vmem:[%s5598_s11 + $0x171] sm:$0xff]  ;;  %v214_v55 = vld [vmem:[%s5598_s11] sm:$0xff] }
  0x2e   : > { %6694 = vst [vmem:[#allocation16_spill] sm:$0xff] %v5850_v51  ;;  %v5853_v52 = vld [vmem:[%s5598_s11 + $0xc2] sm:$0xff]  ;;  %6695 = vst [vmem:[#allocation17_spill] sm:$0xff] %v5864_v53  ;;  %v5867_v54 = vld [vmem:[%s5598_s11 + $0xca] sm:$0xff] }
  0x2f   : > { %4668 = vmatmul.mubr.msk.f32.gmra.mrb[8].mxu1 %vm281_vm0, %v5651_v15  ;;  %4868 = vmatmul.mubr.msk.f32.gmra.mrb[8].mxu0 %vm281_vm0, %v5665_v17  ;;  %v5871_v56 = vld [vmem:[%s5598_s11 + $0xda] sm:$0xff]  ;;  %v215_v57 = vld [vmem:[%s5598_s11 + $0x8] sm:$0xff]  ;;  %v5888_v60 = vld [vmem:[%s5598_s11 + $0xf2] sm:$0xff] }
  0x30   : > { %4670 = vmatprep.mubr.msk.f32.mxu1 %vm281_vm0, %v5654_v16  ;;  %4870 = vmatprep.mubr.msk.f32.mxu0 %vm281_vm0, %v5668_v18  ;;  %v5882_v58 = vld [vmem:[%s5598_s11 + $0xe2] sm:$0xff]  ;;  %v5885_v59 = vld [vmem:[%s5598_s11 + $0x18] sm:$0xff]  ;;  %v5910_v0 = vld [vmem:[%s5598_s11 + $0x30] sm:$0xff] }
  0x31   : > { %6696 = vst [vmem:[#allocation18_spill] sm:$0xff] %v5885_v59  ;;  %v5902_v62 = vld [vmem:[%s5598_s11 + $0x20] sm:$0xff]  ;;  %6698 = vst [vmem:[#allocation20_spill] sm:$0xff] %v5910_v0  ;;  %v5913_v2 = vld [vmem:[%s5598_s11 + $0x10a] sm:$0xff] }
  0x32   : > { %6697 = vst [vmem:[#allocation19_spill] sm:$0xff] %v5902_v62  ;;  %v5905_v63 = vld [vmem:[%s5598_s11 + $0xfa] sm:$0xff]  ;;  %v5928_v4 = vld [vmem:[%s5598_s11 + $0x112] sm:$0xff]  ;;  %v5931_v5 = vld [vmem:[%s5598_s11 + $0x48] sm:$0xff] }
  0x33   : > { %4671 = vmatmul.mubr.msk.f32.gmra.mrb[10].mxu1 %vm281_vm0, %v5665_v17  ;;  %4871 = vmatmul.mubr.msk.f32.gmra.mrb[10].mxu0 %vm281_vm0, %v5679_v19  ;;  %v5925_v3 = vld [vmem:[%s5598_s11 + $0x38] sm:$0xff]  ;;  %6700 = vst [vmem:[#allocation22_spill] sm:$0xff] %v5931_v5  ;;  %v5934_v6 = vld [vmem:[%s5598_s11 + $0x122] sm:$0xff]  ;;  %v5945_v7 = vld [vmem:[%s5598_s11 + $0x50] sm:$0xff] }
  0x34   : > { %4673 = vmatprep.mubr.msk.f32.mxu1 %vm281_vm0, %v5668_v18  ;;  %4873 = vmatprep.mubr.msk.f32.mxu0 %vm281_vm0, %v5682_v20  ;;  %6699 = vst [vmem:[#allocation21_spill] sm:$0xff] %v5925_v3  ;;  %6701 = vst [vmem:[#allocation23_spill] sm:$0xff] %v5945_v7 }
  0x37   : > { %4674 = vmatmul.mubr.msk.f32.gmra.mrb[12].mxu1 %vm281_vm0, %v5679_v19  ;;  %4874 = vmatmul.mubr.msk.f32.gmra.mrb[12].mxu0 %vm281_vm0, %v5693_v21 }
  0x38   : > { %4676 = vmatprep.mubr.msk.f32.mxu1 %vm281_vm0, %v5682_v20  ;;  %4876 = vmatprep.mubr.msk.f32.mxu0 %vm281_vm0, %v5696_v22 }
  0x3b   : > { %4677 = vmatmul.mubr.msk.f32.gmra.mrb[14].mxu1 %vm281_vm0, %v5693_v21  ;;  %4877 = vmatmul.mubr.msk.f32.gmra.mrb[14].mxu0 %vm281_vm0, %v5707_v23 }
  0x3c   : > { %4679 = vmatprep.mubr.msk.f32.mxu1 %vm281_vm0, %v5696_v22  ;;  %4905 = vmatprep.mubr.msk.f32.mxu0 %vm281_vm0, %v5710_v24 }
  0x3f   : > { %4680 = vmatmul.mubr.msk.f32.gmra.mrb[16].mxu1 %vm281_vm0, %v5707_v23  ;;  %4906 = vmatmul.mubr.msk.f32.vlgmr.msra.gmra.mrb[0].mxu0 %vm281_vm0, %v5721_v25 }
  0x40   : > { %4954 = vmatpush3.msra.mxu0 %v4186_v9  ;;  %4682 = vmatprep.mubr.msk.f32.mxu1 %vm281_vm0, %v5724_v26  ;;  %v5948_v9 = vld [vmem:[%s5598_s11 + $0x12a] sm:$0xff] }
  0x41   : > { %4908 = vmatprep.mubr.msk.f32.mxu0 %vm281_vm0, %v5727_v27  ;;  %5003 = vmatprep.subr.mxu0 %v5732_v28 }
  0x43   : > { %4683 = vmatmul.mubr.msk.f32.gmra.mrb[18].mxu1 %vm281_vm0, %v5741_v29  ;;  %4909 = vmatmul.mubr.msk.f32.gmra.mrb[2].mxu0 %vm281_vm0, %v5744_v30  ;;  %v6045_v29 = vld [vmem:[%s5598_s11 + $0xd8] sm:$0xff] }
  0x44   : > { %4685 = vmatprep.mubr.msk.f32.mxu1 %vm281_vm0, %v5749_v31  ;;  %4911 = vmatprep.mubr.msk.f32.mxu0 %vm281_vm0, %v5752_v32  ;;  %v6028_v31 = vld [vmem:[%s5598_s11 + $0x18a] sm:$0xff] }
  0x45   : > { %6712 = vst [vmem:[#allocation34_spill] sm:$0xff] %v6028_v31 }
  0x47   : > { %4686 = vmatmul.mubr.msk.f32.gmra.mrb[20].mxu1 %vm281_vm0, %v5764_v33  ;;  %4912 = vmatmul.mubr.msk.f32.gmra.mrb[4].mxu0 %vm281_vm0, %v5767_v34  ;;  %v6014_v33 = vld [vmem:[%s5598_s11 + $0x182] sm:$0xff] }
  0x48   : > { %4688 = vmatprep.mubr.msk.f32.mxu1 %vm281_vm0, %v5770_v35  ;;  %4914 = vmatprep.mubr.msk.f32.mxu0 %vm281_vm0, %v5773_v36  ;;  %v6011_v35 = vld [vmem:[%s5598_s11 + $0xa8] sm:$0xff]  ;;  %6710 = vst [vmem:[#allocation32_spill] sm:$0xff] %v6014_v33 }
  0x49   : > { %6709 = vst [vmem:[#allocation31_spill] sm:$0xff] %v6011_v35 }
  0x4b   : > { %4689 = vmatmul.mubr.msk.f32.gmra.mrb[22].mxu1 %vm281_vm0, %v5784_v37  ;;  %4915 = vmatmul.mubr.msk.f32.gmra.mrb[6].mxu0 %vm281_vm0, %v5787_v38  ;;  %v6008_v37 = vld [vmem:[%s5598_s11 + $0x172] sm:$0xff] }
  0x4c   : > { %4691 = vmatprep.mubr.msk.f32.mxu1 %vm281_vm0, %v5790_v39  ;;  %4917 = vmatprep.mubr.msk.f32.mxu0 %vm281_vm0, %v5793_v40  ;;  %v6005_v39 = vld [vmem:[%s5598_s11 + $0x98] sm:$0xff]  ;;  %6708 = vst [vmem:[#allocation30_spill] sm:$0xff] %v6008_v37 }
  0x4d   : > { %6707 = vst [vmem:[#allocation29_spill] sm:$0xff] %v6005_v39 }
  0x4f   : > { %4692 = vmatmul.mubr.msk.f32.gmra.mrb[24].mxu1 %vm281_vm0, %v5804_v41  ;;  %4918 = vmatmul.mubr.msk.f32.gmra.mrb[8].mxu0 %vm281_vm0, %v5807_v42  ;;  %v5994_v41 = vld [vmem:[%s5598_s11 + $0x16a] sm:$0xff] }
  0x50   : > { %4694 = vmatprep.mubr.msk.f32.mxu1 %vm281_vm0, %v5810_v43  ;;  %4920 = vmatprep.mubr.msk.f32.mxu0 %vm281_vm0, %v5813_v44  ;;  %v5991_v43 = vld [vmem:[%s5598_s11 + $0x90] sm:$0xff] }
  0x51   : > { %6706 = vst [vmem:[#allocation28_spill] sm:$0xff] %v5991_v43 }
  0x53   : > { %4695 = vmatmul.mubr.msk.f32.gmra.mrb[26].mxu1 %vm281_vm0, %v5824_v45  ;;  %4921 = vmatmul.mubr.msk.f32.gmra.mrb[10].mxu0 %vm281_vm0, %v5827_v46  ;;  %v5988_v45 = vld [vmem:[%s5598_s11 + $0x15a] sm:$0xff] }
  0x54   : > { %4697 = vmatprep.mubr.msk.f32.mxu1 %vm281_vm0, %v5830_v47  ;;  %4923 = vmatprep.mubr.msk.f32.mxu0 %vm281_vm0, %v5833_v48  ;;  %v5985_v47 = vld [vmem:[%s5598_s11 + $0x80] sm:$0xff] }
  0x55   : > { %6705 = vst [vmem:[#allocation27_spill] sm:$0xff] %v5985_v47 }
  0x57   : > { %4698 = vmatmul.mubr.msk.f32.gmra.mrb[28].mxu1 %vm281_vm0, %v5844_v49  ;;  %4924 = vmatmul.mubr.msk.f32.gmra.mrb[12].mxu0 %vm281_vm0, %v5847_v50  ;;  %v5974_v49 = vld [vmem:[%s5598_s11 + $0x152] sm:$0xff] }
  0x58   : > { %4700 = vmatprep.mubr.msk.f32.mxu1 %vm281_vm0, %v5850_v51  ;;  %4926 = vmatprep.mubr.msk.f32.mxu0 %vm281_vm0, %v5853_v52  ;;  %v5971_v51 = vld [vmem:[%s5598_s11 + $0x78] sm:$0xff] }
  0x59   : > { %6704 = vst [vmem:[#allocation26_spill] sm:$0xff] %v5971_v51 }
  0x5b   : > { %4701 = vmatmul.mubr.msk.f32.gmra.mrb[30].mxu1 %vm281_vm0, %v5864_v53  ;;  %4927 = vmatmul.mubr.msk.f32.gmra.mrb[14].mxu0 %vm281_vm0, %v5867_v54  ;;  %v5968_v53 = vld [vmem:[%s5598_s11 + $0x142] sm:$0xff] }
  0x5c   : > { %4705 = vmatprep.mubr.msk.f32.mxu1 %vm281_vm0, %v214_v55  ;;  %4929 = vmatprep.mubr.msk.f32.mxu0 %vm281_vm0, %v5871_v56  ;;  %v5954_v55 = vld [vmem:[%s5598_s11 + $0x13a] sm:$0xff] }
  0x5f   : > { %4706 = vmatmul.mubr.msk.f32.vlgmr.msra.gmra.mrb[0].mxu1 %vm281_vm0, %v215_v57  ;;  %4930 = vmatmul.mubr.msk.f32.gmra.mrb[16].mxu0 %vm281_vm0, %v5882_v58  ;;  %v5965_v57 = vld [vmem:[%s5598_s11 + $0x68] sm:$0xff] }
  0x60   : > { %4754 = vmatpush3.msra.mxu1 %v5617_v10  ;;  %4708 = vmatprep.mubr.msk.f32.mxu1 %vm281_vm0, %v5885_v59  ;;  %v5951_v10 = vld [vmem:[%s5598_s11 + $0x60] sm:$0xff]  ;;  %6703 = vst [vmem:[#allocation25_spill] sm:$0xff] %v5965_v57 }
  0x61   : > { %4932 = vmatprep.mubr.msk.f32.mxu0 %vm281_vm0, %v5888_v60  ;;  %4803 = vmatprep.subr.mxu1 %v5893_v61  ;;  %6702 = vst [vmem:[#allocation24_spill] sm:$0xff] %v5951_v10  ;;  %v6031_v59 = vld [vmem:[%s5598_s11 + $0xc0] sm:$0xff] }
  0x63   : > { %4709 = vmatmul.mubr.msk.f32.gmra.mrb[2].mxu1 %vm281_vm0, %v5902_v62  ;;  %4933 = vmatmul.mubr.msk.f32.gmra.mrb[18].mxu0 %vm281_vm0, %v5905_v63  ;;  %v6025_v62 = vld [vmem:[%s5598_s11 + $0xb0] sm:$0xff] }
  0x64   : > { %4711 = vmatprep.mubr.msk.f32.mxu1 %vm281_vm0, %v5910_v0  ;;  %4935 = vmatprep.mubr.msk.f32.mxu0 %vm281_vm0, %v5913_v2  ;;  %6711 = vst [vmem:[#allocation33_spill] sm:$0xff] %v6025_v62 }
  0x67   : > { %4712 = vmatmul.mubr.msk.f32.gmra.mrb[4].mxu1 %vm281_vm0, %v5925_v3  ;;  %4936 = vmatmul.mubr.msk.f32.gmra.mrb[20].mxu0 %vm281_vm0, %v5928_v4 }
  0x68   : > { %4714 = vmatprep.mubr.msk.f32.mxu1 %vm281_vm0, %v5931_v5  ;;  %4938 = vmatprep.mubr.msk.f32.mxu0 %vm281_vm0, %v5934_v6 }
  0x6b   : > { %4715 = vmatmul.mubr.msk.f32.gmra.mrb[6].mxu1 %vm281_vm0, %v5945_v7  ;;  %4939 = vmatmul.mubr.msk.f32.gmra.mrb[22].mxu0 %vm281_vm0, %v5948_v9 }
  0x6c   : > { %4717 = vmatprep.mubr.msk.f32.mxu1 %vm281_vm0, %v5951_v10  ;;  %4941 = vmatprep.mubr.msk.f32.mxu0 %vm281_vm0, %v5954_v55 }
  0x6f   : > { %4718 = vmatmul.mubr.msk.f32.gmra.mrb[8].mxu1 %vm281_vm0, %v5965_v57  ;;  %4942 = vmatmul.mubr.msk.f32.gmra.mrb[24].mxu0 %vm281_vm0, %v5968_v53 }
  0x70   : > { %4720 = vmatprep.mubr.msk.f32.mxu1 %vm281_vm0, %v5971_v51  ;;  %4944 = vmatprep.mubr.msk.f32.mxu0 %vm281_vm0, %v5974_v49 }
  0x73   : > { %4721 = vmatmul.mubr.msk.f32.gmra.mrb[10].mxu1 %vm281_vm0, %v5985_v47  ;;  %4945 = vmatmul.mubr.msk.f32.gmra.mrb[26].mxu0 %vm281_vm0, %v5988_v45 }
  0x74   : > { %4723 = vmatprep.mubr.msk.f32.mxu1 %vm281_vm0, %v5991_v43  ;;  %4947 = vmatprep.mubr.msk.f32.mxu0 %vm281_vm0, %v5994_v41 }
  0x77   : > { %4724 = vmatmul.mubr.msk.f32.gmra.mrb[12].mxu1 %vm281_vm0, %v6005_v39  ;;  %4948 = vmatmul.mubr.msk.f32.gmra.mrb[28].mxu0 %vm281_vm0, %v6008_v37  ;;  %v6050_v37 = vld [vmem:[%s6633_s1 + $0x40] sm:$0xff] }
  0x78   : > { %4726 = vmatprep.mubr.msk.f32.mxu1 %vm281_vm0, %v6011_v35  ;;  %4950 = vmatprep.mubr.msk.f32.mxu0 %vm281_vm0, %v6014_v33  ;;  %v6042_v33 = vld [vmem:[%s5598_s11 + $0xc8] sm:$0xff] }
  0x79   : > { %6713 = vst [vmem:[#allocation35_spill] sm:$0xff] %v6042_v33 }
  0x7b   : > { %4727 = vmatmul.mubr.msk.f32.gmra.mrb[14].mxu1 %vm281_vm0, %v6025_v62  ;;  %4951 = vmatmul.mubr.msk.f32.gmra.mrb[30].mxu0 %vm281_vm0, %v6028_v31  ;;  %v6060_v31 = vld [vmem:[%s5598_s11 + $0xe0] sm:$0xff] }
  0x7c   : > { %4729 = vmatprep.mubr.msk.f32.mxu1 %vm281_vm0, %v6031_v59  ;;  %4955 = vmatprep.mubr.msk.f32.mxu0 %vm281_vm0, %v5910_v0  ;;  %v6065_v0 = vld [vmem:[%s5598_s11 + $0xf0] sm:$0xff] }
  0x7f   : > { %4730 = vmatmul.mubr.msk.f32.gmra.mrb[16].mxu1 %vm281_vm0, %v6042_v33  ;;  %4956 = vmatmul.mubr.msk.f32.vlgmr.msra.gmra.mrb[0].mxu0 %vm281_vm0, %v5925_v3  ;;  %v924_v3 = vld [vmem:[%s5598_s11 + $0x2] sm:$0xff] }
  0x80   : > { %5004 = vmatpush3.msra.mxu0 %v5732_v28  ;;  %4732 = vmatprep.mubr.msk.f32.mxu1 %vm281_vm0, %v6045_v29  ;;  %v6077_v28 = vld [vmem:[%s5598_s11 + $0xf8] sm:$0xff] }
  0x81   : > { %4958 = vmatprep.mubr.msk.f32.mxu0 %vm281_vm0, %v5931_v5  ;;  %5053 = vmatprep.subr.mxu0 %v6050_v37  ;;  %v6080_v5 = vld [vmem:[%s5598_s11 + $0x108] sm:$0xff] }
  0x83   : > { %4733 = vmatmul.mubr.msk.f32.gmra.mrb[18].mxu1 %vm281_vm0, %v6060_v31  ;;  %4959 = vmatmul.mubr.msk.f32.gmra.mrb[2].mxu0 %vm281_vm0, %v5945_v7  ;;  %v6091_v7 = vld [vmem:[%s5598_s11 + $0x110] sm:$0xff] }
  0x84   : > { %4735 = vmatprep.mubr.msk.f32.mxu1 %vm281_vm0, %v6065_v0  ;;  %4961 = vmatprep.mubr.msk.f32.mxu0 %vm281_vm0, %v5951_v10  ;;  %v6094_v10 = vld [vmem:[%s5598_s11 + $0x120] sm:$0xff] }
  0x87   : > { %4736 = vmatmul.mubr.msk.f32.gmra.mrb[20].mxu1 %vm281_vm0, %v6077_v28  ;;  %4962 = vmatmul.mubr.msk.f32.gmra.mrb[4].mxu0 %vm281_vm0, %v5965_v57  ;;  %v6105_v57 = vld [vmem:[%s5598_s11 + $0x128] sm:$0xff] }
  0x88   : > { %4738 = vmatprep.mubr.msk.f32.mxu1 %vm281_vm0, %v6080_v5  ;;  %4964 = vmatprep.mubr.msk.f32.mxu0 %vm281_vm0, %v5971_v51  ;;  %v6108_v51 = vld [vmem:[%s5598_s11 + $0x138] sm:$0xff] }
  0x8b   : > { %4739 = vmatmul.mubr.msk.f32.gmra.mrb[22].mxu1 %vm281_vm0, %v6091_v7  ;;  %4965 = vmatmul.mubr.msk.f32.gmra.mrb[6].mxu0 %vm281_vm0, %v5985_v47  ;;  %v6119_v47 = vld [vmem:[%s5598_s11 + $0x140] sm:$0xff] }
  0x8c   : > { %4741 = vmatprep.mubr.msk.f32.mxu1 %vm281_vm0, %v6094_v10  ;;  %4967 = vmatprep.mubr.msk.f32.mxu0 %vm281_vm0, %v5991_v43  ;;  %v6122_v43 = vld [vmem:[%s5598_s11 + $0x150] sm:$0xff] }
  0x8f   : > { %4742 = vmatmul.mubr.msk.f32.gmra.mrb[24].mxu1 %vm281_vm0, %v6105_v57  ;;  %4968 = vmatmul.mubr.msk.f32.gmra.mrb[8].mxu0 %vm281_vm0, %v6005_v39  ;;  %v6133_v39 = vld [vmem:[%s5598_s11 + $0x158] sm:$0xff] }
  0x90   : > { %4744 = vmatprep.mubr.msk.f32.mxu1 %vm281_vm0, %v6108_v51  ;;  %4970 = vmatprep.mubr.msk.f32.mxu0 %vm281_vm0, %v6011_v35  ;;  %v6136_v35 = vld [vmem:[%s5598_s11 + $0x168] sm:$0xff] }
  0x93   : > { %4745 = vmatmul.mubr.msk.f32.gmra.mrb[26].mxu1 %vm281_vm0, %v6119_v47  ;;  %4971 = vmatmul.mubr.msk.f32.gmra.mrb[10].mxu0 %vm281_vm0, %v6025_v62  ;;  %v6147_v62 = vld [vmem:[%s5598_s11 + $0x170] sm:$0xff] }
  0x94   : > { %4747 = vmatprep.mubr.msk.f32.mxu1 %vm281_vm0, %v6122_v43  ;;  %4973 = vmatprep.mubr.msk.f32.mxu0 %vm281_vm0, %v6031_v59 }
  0x97   : > { %4748 = vmatmul.mubr.msk.f32.gmra.mrb[28].mxu1 %vm281_vm0, %v6133_v39  ;;  %4974 = vmatmul.mubr.msk.f32.gmra.mrb[12].mxu0 %vm281_vm0, %v6042_v33  ;;  %v925_v33 = vld [vmem:[%s5598_s11 + $0xa] sm:$0xff] }
  0x98   : > { %4750 = vmatprep.mubr.msk.f32.mxu1 %vm281_vm0, %v6136_v35  ;;  %4976 = vmatprep.mubr.msk.f32.mxu0 %vm281_vm0, %v6045_v29 }
  0x9b   : > { %4751 = vmatmul.mubr.msk.f32.gmra.mrb[30].mxu1 %vm281_vm0, %v6147_v62  ;;  %4977 = vmatmul.mubr.msk.f32.gmra.mrb[14].mxu0 %vm281_vm0, %v6060_v31 }
  0x9c   : > { %4755 = vmatprep.mubr.msk.f32.mxu1 %vm281_vm0, %v924_v3  ;;  %4979 = vmatprep.mubr.msk.f32.mxu0 %vm281_vm0, %v6065_v0  ;;  %v6730_v3 = vld [vmem:[#allocation25_spill] sm:$0xff] }
  0x9f   : > { %4756 = vmatmul.mubr.msk.f32.vlgmr.msra.gmra.mrb[0].mxu1 %vm281_vm0, %v925_v33  ;;  %4980 = vmatmul.mubr.msk.f32.gmra.mrb[16].mxu0 %vm281_vm0, %v6077_v28  ;;  %v4184_v33 = vld [vmem:[%s5598_s11 + $0x198] sm:$0xff] }
  0xa0   : > { %4804 = vmatpush3.msra.mxu1 %v5893_v61  ;;  %4758 = vmatprep.mubr.msk.f32.mxu1 %vm281_vm0, %v5710_v24  ;;  %v6200_v24 = vld [vmem:[%s5598_s11 + $0x180] sm:$0xff] }
  0xa1   : > { %4982 = vmatprep.mubr.msk.f32.mxu0 %vm281_vm0, %v6080_v5  ;;  %5103 = vmatprep.subr.mxu1 %v5583_v1  ;;  %v4185_v61 = vld [vmem:[%s5598_s11 + $0x1a0] sm:$0xff] }
  0xa3   : > { %4759 = vmatmul.mubr.msk.f32.gmra.mrb[2].mxu1 %vm281_vm0, %v5721_v25  ;;  %4983 = vmatmul.mubr.msk.f32.gmra.mrb[18].mxu0 %vm281_vm0, %v6091_v7  ;;  %v6211_v25 = vld [vmem:[%s5598_s11 + $0x188] sm:$0xff] }
  0xa4   : > { %4761 = vmatprep.mubr.msk.f32.mxu1 %vm281_vm0, %v5727_v27  ;;  %4985 = vmatprep.mubr.msk.f32.mxu0 %vm281_vm0, %v6094_v10 }
  0xa7   : > { %4762 = vmatmul.mubr.msk.f32.gmra.mrb[4].mxu1 %vm281_vm0, %v5744_v30  ;;  %4986 = vmatmul.mubr.msk.f32.gmra.mrb[20].mxu0 %vm281_vm0, %v6105_v57 }
  0xa8   : > { %4764 = vmatprep.mubr.msk.f32.mxu1 %vm281_vm0, %v5752_v32  ;;  %4988 = vmatprep.mubr.msk.f32.mxu0 %vm281_vm0, %v6108_v51 }
  0xab   : > { %4765 = vmatmul.mubr.msk.f32.gmra.mrb[6].mxu1 %vm281_vm0, %v5767_v34  ;;  %4989 = vmatmul.mubr.msk.f32.gmra.mrb[22].mxu0 %vm281_vm0, %v6119_v47 }
  0xac   : > { %4767 = vmatprep.mubr.msk.f32.mxu1 %vm281_vm0, %v5773_v36  ;;  %4991 = vmatprep.mubr.msk.f32.mxu0 %vm281_vm0, %v6122_v43 }
  0xaf   : > { %4768 = vmatmul.mubr.msk.f32.gmra.mrb[8].mxu1 %vm281_vm0, %v5787_v38  ;;  %4992 = vmatmul.mubr.msk.f32.gmra.mrb[24].mxu0 %vm281_vm0, %v6133_v39 }
  0xb0   : > { %4770 = vmatprep.mubr.msk.f32.mxu1 %vm281_vm0, %v5793_v40  ;;  %4994 = vmatprep.mubr.msk.f32.mxu0 %vm281_vm0, %v6136_v35 }
  0xb3   : > { %4771 = vmatmul.mubr.msk.f32.gmra.mrb[10].mxu1 %vm281_vm0, %v5807_v42  ;;  %4995 = vmatmul.mubr.msk.f32.gmra.mrb[26].mxu0 %vm281_vm0, %v6147_v62 }
  0xb4   : > { %4773 = vmatprep.mubr.msk.f32.mxu1 %vm281_vm0, %v5813_v44  ;;  %4997 = vmatprep.mubr.msk.f32.mxu0 %vm281_vm0, %v6200_v24 }
  0xb7   : > { %4774 = vmatmul.mubr.msk.f32.gmra.mrb[12].mxu1 %vm281_vm0, %v5827_v46  ;;  %4998 = vmatmul.mubr.msk.f32.gmra.mrb[28].mxu0 %vm281_vm0, %v6211_v25 }
  0xb8   : > { %4776 = vmatprep.mubr.msk.f32.mxu1 %vm281_vm0, %v5833_v48  ;;  %5000 = vmatprep.mubr.msk.f32.mxu0 %vm281_vm0, %v4184_v33  ;;  %v6731_v33 = vld [vmem:[#allocation13_spill] sm:$0xff] }
  0xbb   : > { %4777 = vmatmul.mubr.msk.f32.gmra.mrb[14].mxu1 %vm281_vm0, %v5847_v50  ;;  %5001 = vmatmul.mubr.msk.f32.gmra.mrb[30].mxu0 %vm281_vm0, %v4185_v61  ;;  %v6732_v61 = vld [vmem:[#allocation26_spill] sm:$0xff] }
  0xbc   : > { %4779 = vmatprep.mubr.msk.f32.mxu1 %vm281_vm0, %v5853_v52  ;;  %5005 = vmatprep.mubr.msk.f32.mxu0 %vm281_vm0, %v5607_v8  ;;  %v6714_v8 = vld [vmem:[#allocation30_spill] sm:$0xff] }
  0xbf   : > { %4780 = vmatmul.mubr.msk.f32.gmra.mrb[16].mxu1 %vm281_vm0, %v5867_v54  ;;  %5006 = vmatmul.mubr.msk.f32.vlgmr.msra.gmra.mrb[0].mxu0 %vm281_vm0, %v5620_v11  ;;  %v6715_v11 = vld [vmem:[#allocation5_spill] sm:$0xff] }
  0xc0   : > { %5054 = vmatpush3.msra.mxu0 %v6050_v37  ;;  %4782 = vmatprep.mubr.msk.f32.mxu1 %vm281_vm0, %v5871_v56  ;;  %v6729_v37 = vld [vmem:[#allocation12_spill] sm:$0xff] }
  0xc1   : > { %5008 = vmatprep.mubr.msk.f32.mxu0 %vm281_vm0, %v5626_v12  ;;  %v6716_v12 = vld [vmem:[#allocation18_spill] sm:$0xff] }
  0xc3   : > { %4783 = vmatmul.mubr.msk.f32.gmra.mrb[18].mxu1 %vm281_vm0, %v5882_v58  ;;  %5009 = vmatmul.mubr.msk.f32.gmra.mrb[2].mxu0 %vm281_vm0, %v5637_v13  ;;  %v6717_v13 = vld [vmem:[#allocation6_spill] sm:$0xff] }
  0xc4   : > { %4785 = vmatprep.mubr.msk.f32.mxu1 %vm281_vm0, %v5888_v60  ;;  %5011 = vmatprep.mubr.msk.f32.mxu0 %vm281_vm0, %v5640_v14  ;;  %v6718_v14 = vld [vmem:[#allocation19_spill] sm:$0xff] }
  0xc7   : > { %4786 = vmatmul.mubr.msk.f32.gmra.mrb[20].mxu1 %vm281_vm0, %v5905_v63  ;;  %5012 = vmatmul.mubr.msk.f32.gmra.mrb[4].mxu0 %vm281_vm0, %v5651_v15  ;;  %v6719_v15 = vld [vmem:[#allocation7_spill] sm:$0xff] }
  0xc8   : > { %4788 = vmatprep.mubr.msk.f32.mxu1 %vm281_vm0, %v5913_v2  ;;  %5014 = vmatprep.mubr.msk.f32.mxu0 %vm281_vm0, %v5654_v16  ;;  %v6720_v16 = vld [vmem:[#allocation20_spill] sm:$0xff] }
  0xcb   : > { %4789 = vmatmul.mubr.msk.f32.gmra.mrb[22].mxu1 %vm281_vm0, %v5928_v4  ;;  %5015 = vmatmul.mubr.msk.f32.gmra.mrb[6].mxu0 %vm281_vm0, %v5665_v17  ;;  %v6721_v17 = vld [vmem:[#allocation8_spill] sm:$0xff] }
  0xcc   : > { %4791 = vmatprep.mubr.msk.f32.mxu1 %vm281_vm0, %v5934_v6  ;;  %5017 = vmatprep.mubr.msk.f32.mxu0 %vm281_vm0, %v5668_v18  ;;  %v6722_v18 = vld [vmem:[#allocation21_spill] sm:$0xff] }
  0xcf   : > { %4792 = vmatmul.mubr.msk.f32.gmra.mrb[24].mxu1 %vm281_vm0, %v5948_v9  ;;  %5018 = vmatmul.mubr.msk.f32.gmra.mrb[8].mxu0 %vm281_vm0, %v5679_v19  ;;  %v6723_v19 = vld [vmem:[#allocation9_spill] sm:$0xff] }
  0xd0   : > { %4794 = vmatprep.mubr.msk.f32.mxu1 %vm281_vm0, %v5954_v55  ;;  %5020 = vmatprep.mubr.msk.f32.mxu0 %vm281_vm0, %v5682_v20  ;;  %v6724_v20 = vld [vmem:[#allocation22_spill] sm:$0xff] }
  0xd3   : > { %4795 = vmatmul.mubr.msk.f32.gmra.mrb[26].mxu1 %vm281_vm0, %v5968_v53  ;;  %5021 = vmatmul.mubr.msk.f32.gmra.mrb[10].mxu0 %vm281_vm0, %v5693_v21  ;;  %v6725_v21 = vld [vmem:[#allocation10_spill] sm:$0xff] }
  0xd4   : > { %4797 = vmatprep.mubr.msk.f32.mxu1 %vm281_vm0, %v5974_v49  ;;  %5023 = vmatprep.mubr.msk.f32.mxu0 %vm281_vm0, %v5696_v22  ;;  %v6727_v22 = vld [vmem:[#allocation11_spill] sm:$0xff] }
  0xd7   : > { %4798 = vmatmul.mubr.msk.f32.gmra.mrb[28].mxu1 %vm281_vm0, %v5988_v45  ;;  %5024 = vmatmul.mubr.msk.f32.gmra.mrb[12].mxu0 %vm281_vm0, %v5707_v23  ;;  %v6728_v23 = vld [vmem:[#allocation24_spill] sm:$0xff] }
  0xd8   : > { %4800 = vmatprep.mubr.msk.f32.mxu1 %vm281_vm0, %v5994_v41  ;;  %5026 = vmatprep.mubr.msk.f32.mxu0 %vm281_vm0, %v5724_v26 }
  0xdb   : > { %4801 = vmatmul.mubr.msk.f32.gmra.mrb[30].mxu1 %vm281_vm0, %v6714_v8  ;;  %5027 = vmatmul.mubr.msk.f32.gmra.mrb[14].mxu0 %vm281_vm0, %v6715_v11  ;;  %v6741_v8 = vld [vmem:[#allocation33_spill] sm:$0xff] }
  0xdc   : > { %4805 = vmatprep.mubr.msk.f32.mxu1 %vm281_vm0, %v6716_v12  ;;  %5029 = vmatprep.mubr.msk.f32.mxu0 %vm281_vm0, %v6717_v13  ;;  %v6733_v12 = vld [vmem:[#allocation14_spill] sm:$0xff] }
  0xdf   : > { %4806 = vmatmul.mubr.msk.f32.vlgmr.msra.gmra.mrb[0].mxu1 %vm281_vm0, %v6718_v14  ;;  %5030 = vmatmul.mubr.msk.f32.gmra.mrb[16].mxu0 %vm281_vm0, %v6719_v15  ;;  %v6734_v14 = vld [vmem:[#allocation27_spill] sm:$0xff] }
  0xe0   : > { %5104 = vmatpush3.msra.mxu1 %v5583_v1  ;;  %4808 = vmatprep.mubr.msk.f32.mxu1 %vm281_vm0, %v6720_v16  ;;  %v6726_v1 = vld [vmem:[#allocation23_spill] sm:$0xff] }
  0xe1   : > { %5032 = vmatprep.mubr.msk.f32.mxu0 %vm281_vm0, %v6721_v17  ;;  %v6735_v16 = vld [vmem:[#allocation15_spill] sm:$0xff] }
  0xe3   : > { %4809 = vmatmul.mubr.msk.f32.gmra.mrb[2].mxu1 %vm281_vm0, %v6722_v18  ;;  %5033 = vmatmul.mubr.msk.f32.gmra.mrb[18].mxu0 %vm281_vm0, %v6723_v19  ;;  %v6736_v18 = vld [vmem:[#allocation28_spill] sm:$0xff] }
  0xe4   : > { %4811 = vmatprep.mubr.msk.f32.mxu1 %vm281_vm0, %v6724_v20  ;;  %5035 = vmatprep.mubr.msk.f32.mxu0 %vm281_vm0, %v6725_v21  ;;  %v6737_v20 = vld [vmem:[#allocation16_spill] sm:$0xff] }
  0xe7   : > { %4812 = vmatmul.mubr.msk.f32.gmra.mrb[4].mxu1 %vm281_vm0, %v6726_v1  ;;  %5036 = vmatmul.mubr.msk.f32.gmra.mrb[20].mxu0 %vm281_vm0, %v6727_v22  ;;  %v6336_v1 = vld [vmem:[%s5598_s11 + $0x181] sm:$0xff] }
  0xe8   : > { %4814 = vmatprep.mubr.msk.f32.mxu1 %vm281_vm0, %v6728_v23  ;;  %5038 = vmatprep.mubr.msk.f32.mxu0 %vm281_vm0, %v6729_v37  ;;  %v6738_v23 = vld [vmem:[#allocation29_spill] sm:$0xff] }
  0xeb   : > { %4815 = vmatmul.mubr.msk.f32.gmra.mrb[6].mxu1 %vm281_vm0, %v6730_v3  ;;  %5039 = vmatmul.mubr.msk.f32.gmra.mrb[22].mxu0 %vm281_vm0, %v6731_v33  ;;  %v6739_v3 = vld [vmem:[#allocation17_spill] sm:$0xff] }
  0xec   : > { %4817 = vmatprep.mubr.msk.f32.mxu1 %vm281_vm0, %v6732_v61  ;;  %5041 = vmatprep.mubr.msk.f32.mxu0 %vm281_vm0, %v6733_v12  ;;  %v6740_v61 = vld [vmem:[#allocation31_spill] sm:$0xff] }
  0xef   : > { %4818 = vmatmul.mubr.msk.f32.gmra.mrb[8].mxu1 %vm281_vm0, %v6734_v14  ;;  %5042 = vmatmul.mubr.msk.f32.gmra.mrb[24].mxu0 %vm281_vm0, %v6735_v16  ;;  %v6347_v14 = vld [vmem:[%s5598_s11 + $0x189] sm:$0xff] }
  0xf0   : > { %4820 = vmatprep.mubr.msk.f32.mxu1 %vm281_vm0, %v6736_v18  ;;  %5044 = vmatprep.mubr.msk.f32.mxu0 %vm281_vm0, %v6737_v20  ;;  %v4249_v18 = vld [vmem:[%s5598_s11 + $0x199] sm:$0xff] }
  0xf3   : > { %4821 = vmatmul.mubr.msk.f32.gmra.mrb[10].mxu1 %vm281_vm0, %v6738_v23  ;;  %5045 = vmatmul.mubr.msk.f32.gmra.mrb[26].mxu0 %vm281_vm0, %v6739_v3  ;;  %v4250_v23 = vld [vmem:[%s5598_s11 + $0x1a1] sm:$0xff]  ;;  %v6742_v3 = vld [vmem:[#allocation35_spill] sm:$0xff] }
  0xf4   : > { %4823 = vmatprep.mubr.msk.f32.mxu1 %vm281_vm0, %v6740_v61  ;;  %5047 = vmatprep.mubr.msk.f32.mxu0 %vm281_vm0, %v6336_v1 }
  0xf7   : > { %4824 = vmatmul.mubr.msk.f32.gmra.mrb[12].mxu1 %vm281_vm0, %v6741_v8  ;;  %5048 = vmatmul.mubr.msk.f32.gmra.mrb[28].mxu0 %vm281_vm0, %v6347_v14 }
  0xf8   : > { %4826 = vmatprep.mubr.msk.f32.mxu1 %vm281_vm0, %v6031_v59  ;;  %5050 = vmatprep.mubr.msk.f32.mxu0 %vm281_vm0, %v4249_v18 }
  0xfb   : > { %4827 = vmatmul.mubr.msk.f32.gmra.mrb[14].mxu1 %vm281_vm0, %v6742_v3  ;;  %5051 = vmatmul.mubr.msk.f32.gmra.mrb[30].mxu0 %vm281_vm0, %v4250_v23 }
  0xfc   : > { %4829 = vmatprep.mubr.msk.f32.mxu1 %vm281_vm0, %v6045_v29  ;;  %5055 = vmatprep.mubr.msk.f32.mxu0 %vm281_vm0, %v5727_v27  ;;  %v6744_v27 = vld [vmem:[#allocation32_spill] sm:$0xff] }
  0xfd   : > { %v4314_v29 = vld [vmem:[%s5598_s11 + $0x19a] sm:$0xff] }
  0xff   : > { %4830 = vmatmul.mubr.msk.f32.gmra.mrb[16].mxu1 %vm281_vm0, %v6060_v31  ;;  %5056 = vmatmul.mubr.msk.f32.vlgmr.msra.gmra.mrb[0].mxu0 %vm281_vm0, %v5744_v30  ;;  %v6745_v30 = vld [vmem:[#allocation17_spill] sm:$0xff]  ;;  %v6746_v31 = vld [vmem:[#allocation34_spill] sm:$0xff] }
 0x100   : > { %4832 = vmatprep.mubr.msk.f32.mxu1 %vm281_vm0, %v6065_v0  ;;  %5058 = vmatprep.mubr.msk.f32.mxu0 %vm281_vm0, %v5752_v32  ;;  %v4315_v32 = vld [vmem:[%s5598_s11 + $0x1a2] sm:$0xff]  ;;  %s3753_s11 = sshll.u32 %s6507_s9, 4  ;;  %s6580_s11 = int_to_ptr.vmem [resolvable:$true] %s3753_s11 }
 0x101   : > { %s5419_s23 = scalar_lea.vmem %s6580_s11, 4096  ;;  %p5426_p1 = scmp.lt.s32.totalorder %s6580_s11, %s5424_s27 }
 0x102   : > { %p5420_p12 = scmp.ne.s32.totalorder %s6580_s11, %s5419_s23  ;;  %p5427_p2 = scmp.lt.s32.totalorder %s5425_s28, %s5419_s23 }
 0x103   : > { %4833 = vmatmul.mubr.msk.f32.gmra.mrb[18].mxu1 %vm281_vm0, %v6077_v28  ;;  %5059 = vmatmul.mubr.msk.f32.gmra.mrb[2].mxu0 %vm281_vm0, %v5767_v34 }
 0x104   : > { %4835 = vmatprep.mubr.msk.f32.mxu1 %vm281_vm0, %v6080_v5  ;;  %5061 = vmatprep.mubr.msk.f32.mxu0 %vm281_vm0, %v5773_v36  ;;  %p5421_p13 = pnand %p5420_p12, %p5562_p4  ;;  %p5428_p3 = por %p5427_p2, %p5426_p1 }
 0x106   : > { %p5422_p0 = pneg %p5421_p13 }
 0x107   : > { %4836 = vmatmul.mubr.msk.f32.gmra.mrb[20].mxu1 %vm281_vm0, %v6091_v7  ;;  %5062 = vmatmul.mubr.msk.f32.gmra.mrb[4].mxu0 %vm281_vm0, %v5787_v38 }
 0x108   : > { %4838 = vmatprep.mubr.msk.f32.mxu1 %vm281_vm0, %v6094_v10  ;;  %5064 = vmatprep.mubr.msk.f32.mxu0 %vm281_vm0, %v5793_v40  ;;  %p5429_p5 = pnand %p5428_p3, %p5422_p0 }
 0x10b   : > { %4839 = vmatmul.mubr.msk.f32.gmra.mrb[22].mxu1 %vm281_vm0, %v6105_v57  ;;  %5065 = vmatmul.mubr.msk.f32.gmra.mrb[6].mxu0 %vm281_vm0, %v5807_v42 }
 0x10c   : > { %4841 = vmatprep.mubr.msk.f32.mxu1 %vm281_vm0, %v6108_v51  ;;  %5067 = vmatprep.mubr.msk.f32.mxu0 %vm281_vm0, %v5813_v44 }
 0x10f   : > { %4842 = vmatmul.mubr.msk.f32.gmra.mrb[24].mxu1 %vm281_vm0, %v6119_v47  ;;  %5068 = vmatmul.mubr.msk.f32.gmra.mrb[8].mxu0 %vm281_vm0, %v5827_v46 }
 0x110   : > { %4844 = vmatprep.mubr.msk.f32.mxu1 %vm281_vm0, %v6122_v43  ;;  %5070 = vmatprep.mubr.msk.f32.mxu0 %vm281_vm0, %v5833_v48 }
 0x113   : > { %4845 = vmatmul.mubr.msk.f32.gmra.mrb[26].mxu1 %vm281_vm0, %v6133_v39  ;;  %5071 = vmatmul.mubr.msk.f32.gmra.mrb[10].mxu0 %vm281_vm0, %v5847_v50 }
 0x114   : > { %4847 = vmatprep.mubr.msk.f32.mxu1 %vm281_vm0, %v6136_v35  ;;  %5073 = vmatprep.mubr.msk.f32.mxu0 %vm281_vm0, %v5853_v52  ;;  %v6501_v52 = vld [vmem:[%s6634_s2] ss:$0 sm:$0xff] }
 0x117   : > { %4848 = vmatmul.mubr.msk.f32.gmra.mrb[28].mxu1 %vm281_vm0, %v6147_v62  ;;  %5074 = vmatmul.mubr.msk.f32.gmra.mrb[12].mxu0 %vm281_vm0, %v5867_v54 }
 0x118   : > { %4850 = vmatprep.mubr.msk.f32.mxu1 %vm281_vm0, %v6200_v24  ;;  %5076 = vmatprep.mubr.msk.f32.mxu0 %vm281_vm0, %v5871_v56 }
 0x11b   : > { %4851 = vmatmul.mubr.msk.f32.gmra.mrb[30].mxu1 %vm281_vm0, %v6211_v25  ;;  %5077 = vmatmul.mubr.msk.f32.gmra.mrb[14].mxu0 %vm281_vm0, %v5882_v58 }
 0x11c   : > { %4879 = vmatprep.mubr.msk.f32.mxu1 %vm281_vm0, %v5724_v26  ;;  %5079 = vmatprep.mubr.msk.f32.mxu0 %vm281_vm0, %v5888_v60  ;;  %v6743_v26 = vld [vmem:[#allocation30_spill] sm:$0xff] }
 0x11f   : > { %4880 = vmatmul.mubr.msk.f32.vlgmr.msra.gmra.mrb[16].mxu1 %vm281_vm0, %v6715_v11  ;;  %5080 = vmatmul.mubr.msk.f32.gmra.mrb[16].mxu0 %vm281_vm0, %v5905_v63 }
 0x120   : > { %4882 = vmatprep.mubr.msk.f32.mxu1 %vm281_vm0, %v6717_v13  ;;  %5082 = vmatprep.mubr.msk.f32.mxu0 %vm281_vm0, %v5913_v2 }
 0x123   : > { %4883 = vmatmul.mubr.msk.f32.gmra.mrb[18].mxu1 %vm281_vm0, %v6719_v15  ;;  %5083 = vmatmul.mubr.msk.f32.gmra.mrb[18].mxu0 %vm281_vm0, %v5928_v4 }
 0x124   : > { %4885 = vmatprep.mubr.msk.f32.mxu1 %vm281_vm0, %v6721_v17  ;;  %5085 = vmatprep.mubr.msk.f32.mxu0 %vm281_vm0, %v5934_v6 }
 0x127   : > { %4886 = vmatmul.mubr.msk.f32.gmra.mrb[20].mxu1 %vm281_vm0, %v6723_v19  ;;  %5086 = vmatmul.mubr.msk.f32.gmra.mrb[20].mxu0 %vm281_vm0, %v5948_v9 }
 0x128   : > { %4888 = vmatprep.mubr.msk.f32.mxu1 %vm281_vm0, %v6725_v21  ;;  %5088 = vmatprep.mubr.msk.f32.mxu0 %vm281_vm0, %v5954_v55 }
 0x12b   : > { %4889 = vmatmul.mubr.msk.f32.gmra.mrb[22].mxu1 %vm281_vm0, %v6727_v22  ;;  %5089 = vmatmul.mubr.msk.f32.gmra.mrb[22].mxu0 %vm281_vm0, %v5968_v53 }
 0x12c   : > { %4891 = vmatprep.mubr.msk.f32.mxu1 %vm281_vm0, %v6729_v37  ;;  %5091 = vmatprep.mubr.msk.f32.mxu0 %vm281_vm0, %v5974_v49 }
 0x12f   : > { %4892 = vmatmul.mubr.msk.f32.gmra.mrb[24].mxu1 %vm281_vm0, %v6731_v33  ;;  %5092 = vmatmul.mubr.msk.f32.gmra.mrb[24].mxu0 %vm281_vm0, %v5988_v45 }
 0x130   : > { %4894 = vmatprep.mubr.msk.f32.mxu1 %vm281_vm0, %v6733_v12  ;;  %5094 = vmatprep.mubr.msk.f32.mxu0 %vm281_vm0, %v5994_v41 }
 0x133   : > { %4895 = vmatmul.mubr.msk.f32.gmra.mrb[26].mxu1 %vm281_vm0, %v6735_v16  ;;  %5095 = vmatmul.mubr.msk.f32.gmra.mrb[26].mxu0 %vm281_vm0, %v6743_v26 }
 0x134   : > { %4897 = vmatprep.mubr.msk.f32.mxu1 %vm281_vm0, %v6737_v20  ;;  %5097 = vmatprep.mubr.msk.f32.mxu0 %vm281_vm0, %v6744_v27 }
 0x137   : > { %4898 = vmatmul.mubr.msk.f32.gmra.mrb[28].mxu1 %vm281_vm0, %v6745_v30  ;;  %5098 = vmatmul.mubr.msk.f32.gmra.mrb[28].mxu0 %vm281_vm0, %v6746_v31 }
 0x138   : > { %4900 = vmatprep.mubr.msk.f32.mxu1 %vm281_vm0, %v6336_v1  ;;  %5100 = vmatprep.mubr.msk.f32.mxu0 %vm281_vm0, %v4314_v29 }
 0x13b   : > { %4901 = vmatmul.mubr.msk.f32.gmra.mrb[30].mxu1 %vm281_vm0, %v6347_v14  ;;  %5101 = vmatmul.mubr.msk.f32.gmra.mrb[30].mxu0 %vm281_vm0, %v4315_v32 }
 0x1b2   : > { %v4807_v34 = vpop.f32.mrb[0].mxu1 }
 0x1b3   : > { %v1508_v35 = vpop.f32.mrb[1].mxu1 }
 0x1b6   : > { %v4810_v36 = vpop.f32.mrb[2].mxu1 }
 0x1b7   : > { %v1518_v38 = vpop.f32.mrb[3].mxu1 }
 0x1ba   : > { %v4813_v39 = vpop.f32.mrb[4].mxu1 }
 0x1bb   : > { %v1528_v40 = vpop.f32.mrb[5].mxu1 }
 0x1be   : > { %v4816_v41 = vpop.f32.mrb[6].mxu1 }
 0x1bf   : > { %v1538_v42 = vpop.f32.mrb[7].mxu1 }
 0x1c2   : > { %v4819_v43 = vpop.f32.mrb[8].mxu1 }
 0x1c3   : > { %v1548_v44 = vpop.f32.mrb[9].mxu1 }
 0x1c6   : > { %v4822_v45 = vpop.f32.mrb[10].mxu1 }
 0x1c7   : > { %v1558_v46 = vpop.f32.mrb[11].mxu1 }
 0x1ca   : > { %v6489_v47 = vpop.f32.mrb[12].mxu1 }
 0x1cb   : > { %v6491_v48 = vpop.f32.mrb[13].mxu1 }
 0x1ce   : > { %v6493_v49 = vpop.f32.mrb[14].mxu1 }
 0x1cf   : > { %v6495_v50 = vpop.f32.mrb[15].mxu1 }
 0x1d2   : > { %v5057_v51 = vpop.f32.mrb[0].mxu0 }
 0x1d3   : > { %v5105_v53 = vadd.f32 %v5057_v51, %v4807_v34  ;;  %v3444_v54 = vpop.f32.mrb[1].mxu0 }
 0x1d4   : > { %v5106_v56 = vadd.f32 %v3444_v54, %v1508_v35 }
 0x1d5   : > { %v3643_v58 = vadd.f32 %v5105_v53, %v6501_v52 }
 0x1d6   : > { %v3642_v59 = vadd.f32 %v5106_v56, %v6501_v52  ;;  %v5060_v60 = vpop.f32.mrb[2].mxu0 }
 0x1d7   : > { %v3675_v62 = vmax.f32 %v3643_v58, 0.0  ;;  %v5107_v63 = vadd.f32 %v5060_v60, %v4810_v36  ;;  %v3454_v0 = vpop.f32.mrb[3].mxu0 }
 0x1d8   : > { %v3674_v2 = vmax.f32 %v3642_v59, 0.0  ;;  %v5108_v4 = vadd.f32 %v3454_v0, %v1518_v38 }
 0x1d9   : > { %3707 = vst [vmem:[%s6507_s9 + $0x8] sm:$0xff] %v3675_v62  ;;  %v3645_v5 = vadd.f32 %v5107_v63, %v6501_v52 }
 0x1da   : > { %3706 = vst [vmem:[%s6507_s9] sm:$0xff] %v3674_v2  ;;  %v3644_v6 = vadd.f32 %v5108_v4, %v6501_v52  ;;  %v5063_v7 = vpop.f32.mrb[4].mxu0 }
 0x1db   : > { %v3677_v9 = vmax.f32 %v3645_v5, 0.0  ;;  %v5109_v10 = vadd.f32 %v5063_v7, %v4813_v39  ;;  %v3464_v55 = vpop.f32.mrb[5].mxu0 }
 0x1dc   : > { %v3676_v57 = vmax.f32 %v3644_v6, 0.0  ;;  %v5110_v28 = vadd.f32 %v3464_v55, %v1528_v40 }
 0x1dd   : > { %3709 = vst [vmem:[%s6507_s9 + $0x18] sm:$0xff] %v3677_v9  ;;  %v3647_v24 = vadd.f32 %v5109_v10, %v6501_v52 }
 0x1de   : > { %3708 = vst [vmem:[%s6507_s9 + $0x10] sm:$0xff] %v3676_v57  ;;  %v3646_v25 = vadd.f32 %v5110_v28, %v6501_v52  ;;  %v5066_v8 = vpop.f32.mrb[6].mxu0 }
 0x1df   : > { %v3679_v11 = vmax.f32 %v3647_v24, 0.0  ;;  %v5111_v13 = vadd.f32 %v5066_v8, %v4816_v41  ;;  %v3474_v15 = vpop.f32.mrb[7].mxu0 }
 0x1e0   : > { %v3678_v17 = vmax.f32 %v3646_v25, 0.0  ;;  %v5112_v19 = vadd.f32 %v3474_v15, %v1538_v42 }
 0x1e1   : > { %3711 = vst [vmem:[%s6507_s9 + $0x28] sm:$0xff] %v3679_v11  ;;  %v3649_v21 = vadd.f32 %v5111_v13, %v6501_v52 }
 0x1e2   : > { %3710 = vst [vmem:[%s6507_s9 + $0x20] sm:$0xff] %v3678_v17  ;;  %v3648_v22 = vadd.f32 %v5112_v19, %v6501_v52  ;;  %v5069_v37 = vpop.f32.mrb[8].mxu0 }
 0x1e3   : > { %v3681_v33 = vmax.f32 %v3649_v21, 0.0  ;;  %v5113_v12 = vadd.f32 %v5069_v37, %v4819_v43  ;;  %v3484_v16 = vpop.f32.mrb[9].mxu0 }
 0x1e4   : > { %v3680_v20 = vmax.f32 %v3648_v22, 0.0  ;;  %v5114_v1 = vadd.f32 %v3484_v16, %v1548_v44 }
 0x1e5   : > { %3713 = vst [vmem:[%s6507_s9 + $0x38] sm:$0xff] %v3681_v33  ;;  %v3651_v3 = vadd.f32 %v5113_v12, %v6501_v52 }
 0x1e6   : > { %3712 = vst [vmem:[%s6507_s9 + $0x30] sm:$0xff] %v3680_v20  ;;  %v3650_v61 = vadd.f32 %v5114_v1, %v6501_v52  ;;  %v5072_v14 = vpop.f32.mrb[10].mxu0 }
 0x1e7   : > { %v3683_v18 = vmax.f32 %v3651_v3, 0.0  ;;  %v5115_v23 = vadd.f32 %v5072_v14, %v4822_v45  ;;  %v3494_v26 = vpop.f32.mrb[11].mxu0 }
 0x1e8   : > { %v3682_v27 = vmax.f32 %v3650_v61, 0.0  ;;  %v5116_v29 = vadd.f32 %v3494_v26, %v1558_v46 }
 0x1e9   : > { %3715 = vst [vmem:[%s6507_s9 + $0x48] sm:$0xff] %v3683_v18  ;;  %v3653_v30 = vadd.f32 %v5115_v23, %v6501_v52 }
 0x1ea   : > { %3714 = vst [vmem:[%s6507_s9 + $0x40] sm:$0xff] %v3682_v27  ;;  %v3652_v31 = vadd.f32 %v5116_v29, %v6501_v52  ;;  %v5075_v32 = vpop.f32.mrb[12].mxu0 }
 0x1eb   : > { %v3685_v34 = vmax.f32 %v3653_v30, 0.0  ;;  %v5117_v35 = vadd.f32 %v5075_v32, %v6489_v47  ;;  %v3504_v36 = vpop.f32.mrb[13].mxu0 }
 0x1ec   : > { %v3684_v38 = vmax.f32 %v3652_v31, 0.0  ;;  %v5118_v39 = vadd.f32 %v3504_v36, %v6491_v48 }
 0x1ed   : > { %3717 = vst [vmem:[%s6507_s9 + $0x58] sm:$0xff] %v3685_v34  ;;  %v3655_v40 = vadd.f32 %v5117_v35, %v6501_v52 }
 0x1ee   : > { %3716 = vst [vmem:[%s6507_s9 + $0x50] sm:$0xff] %v3684_v38  ;;  %v3654_v41 = vadd.f32 %v5118_v39, %v6501_v52  ;;  %v5078_v42 = vpop.f32.mrb[14].mxu0 }
 0x1ef   : > { %v3687_v43 = vmax.f32 %v3655_v40, 0.0  ;;  %v5119_v44 = vadd.f32 %v5078_v42, %v6493_v49  ;;  %v3514_v45 = vpop.f32.mrb[15].mxu0 }
 0x1f0   : > { %v3686_v46 = vmax.f32 %v3654_v41, 0.0  ;;  %v5120_v47 = vadd.f32 %v3514_v45, %v6495_v50 }
 0x1f1   : > { %3719 = vst [vmem:[%s6507_s9 + $0x68] sm:$0xff] %v3687_v43  ;;  %v3657_v51 = vadd.f32 %v5119_v44, %v6501_v52 }
 0x1f2   : > { %3718 = vst [vmem:[%s6507_s9 + $0x60] sm:$0xff] %v3686_v46  ;;  %v3656_v48 = vadd.f32 %v5120_v47, %v6501_v52  ;;  %v4881_v53 = vpop.f32.mrb[16].mxu1  ;;  %v5081_v54 = vpop.f32.mrb[16].mxu0 }
 0x1f3   : > { %v3689_v56 = vmax.f32 %v3657_v51, 0.0  ;;  %v5121_v58 = vadd.f32 %v5081_v54, %v4881_v53  ;;  %v1975_v59 = vpop.f32.mrb[17].mxu1  ;;  %v3524_v60 = vpop.f32.mrb[17].mxu0 }
 0x1f4   : > { %v3688_v49 = vmax.f32 %v3656_v48, 0.0  ;;  %v5122_v62 = vadd.f32 %v3524_v60, %v1975_v59 }
 0x1f5   : > { %3721 = vst [vmem:[%s6507_s9 + $0x78] sm:$0xff] %v3689_v56  ;;  %v3659_v63 = vadd.f32 %v5121_v58, %v6501_v52 }
 0x1f6   : > { %3720 = vst [vmem:[%s6507_s9 + $0x70] sm:$0xff] %v3688_v49  ;;  %v3658_v50 = vadd.f32 %v5122_v62, %v6501_v52  ;;  %v4884_v0 = vpop.f32.mrb[18].mxu1  ;;  %v5084_v2 = vpop.f32.mrb[18].mxu0 }
 0x1f7   : > { %v3691_v4 = vmax.f32 %v3659_v63, 0.0  ;;  %v5123_v5 = vadd.f32 %v5084_v2, %v4884_v0  ;;  %v1985_v6 = vpop.f32.mrb[19].mxu1  ;;  %v3534_v7 = vpop.f32.mrb[19].mxu0 }
 0x1f8   : > { %v3690_v9 = vmax.f32 %v3658_v50, 0.0  ;;  %v5124_v10 = vadd.f32 %v3534_v7, %v1985_v6 }
 0x1f9   : > { %3723 = vst [vmem:[%s6507_s9 + $0x88] sm:$0xff] %v3691_v4  ;;  %v3661_v55 = vadd.f32 %v5123_v5, %v6501_v52 }
 0x1fa   : > { %3722 = vst [vmem:[%s6507_s9 + $0x80] sm:$0xff] %v3690_v9  ;;  %v3660_v57 = vadd.f32 %v5124_v10, %v6501_v52  ;;  %v4887_v28 = vpop.f32.mrb[20].mxu1  ;;  %v5087_v24 = vpop.f32.mrb[20].mxu0 }
 0x1fb   : > { %v3693_v25 = vmax.f32 %v3661_v55, 0.0  ;;  %v5125_v8 = vadd.f32 %v5087_v24, %v4887_v28  ;;  %v1995_v11 = vpop.f32.mrb[21].mxu1  ;;  %v3544_v13 = vpop.f32.mrb[21].mxu0 }
 0x1fc   : > { %v3692_v15 = vmax.f32 %v3660_v57, 0.0  ;;  %v5126_v17 = vadd.f32 %v3544_v13, %v1995_v11 }
 0x1fd   : > { %3725 = vst [vmem:[%s6507_s9 + $0x98] sm:$0xff] %v3693_v25  ;;  %v3663_v19 = vadd.f32 %v5125_v8, %v6501_v52 }
 0x1fe   : > { %3724 = vst [vmem:[%s6507_s9 + $0x90] sm:$0xff] %v3692_v15  ;;  %v3662_v21 = vadd.f32 %v5126_v17, %v6501_v52  ;;  %v4890_v22 = vpop.f32.mrb[22].mxu1  ;;  %v5090_v37 = vpop.f32.mrb[22].mxu0 }
 0x1ff   : > { %v3695_v33 = vmax.f32 %v3663_v19, 0.0  ;;  %v5127_v12 = vadd.f32 %v5090_v37, %v4890_v22  ;;  %v2005_v16 = vpop.f32.mrb[23].mxu1  ;;  %v3554_v20 = vpop.f32.mrb[23].mxu0 }
 0x200   : > { %v3694_v1 = vmax.f32 %v3662_v21, 0.0  ;;  %v5128_v3 = vadd.f32 %v3554_v20, %v2005_v16 }
 0x201   : > { %3727 = vst [vmem:[%s6507_s9 + $0xa8] sm:$0xff] %v3695_v33  ;;  %v3665_v61 = vadd.f32 %v5127_v12, %v6501_v52 }
 0x202   : > { %3726 = vst [vmem:[%s6507_s9 + $0xa0] sm:$0xff] %v3694_v1  ;;  %v3664_v14 = vadd.f32 %v5128_v3, %v6501_v52  ;;  %v4893_v18 = vpop.f32.mrb[24].mxu1  ;;  %v5093_v23 = vpop.f32.mrb[24].mxu0 }
 0x203   : > { %v3697_v26 = vmax.f32 %v3665_v61, 0.0  ;;  %v5129_v27 = vadd.f32 %v5093_v23, %v4893_v18  ;;  %v2015_v29 = vpop.f32.mrb[25].mxu1  ;;  %v3564_v30 = vpop.f32.mrb[25].mxu0 }
 0x204   : > { %v3696_v31 = vmax.f32 %v3664_v14, 0.0  ;;  %v5130_v32 = vadd.f32 %v3564_v30, %v2015_v29 }
 0x205   : > { %3729 = vst [vmem:[%s6507_s9 + $0xb8] sm:$0xff] %v3697_v26  ;;  %v3667_v34 = vadd.f32 %v5129_v27, %v6501_v52 }
 0x206   : > { %3728 = vst [vmem:[%s6507_s9 + $0xb0] sm:$0xff] %v3696_v31  ;;  %v3666_v35 = vadd.f32 %v5130_v32, %v6501_v52  ;;  %v4896_v36 = vpop.f32.mrb[26].mxu1  ;;  %v5096_v38 = vpop.f32.mrb[26].mxu0 }
 0x207   : > { %v3699_v39 = vmax.f32 %v3667_v34, 0.0  ;;  %v5131_v40 = vadd.f32 %v5096_v38, %v4896_v36  ;;  %v2025_v41 = vpop.f32.mrb[27].mxu1  ;;  %v3574_v42 = vpop.f32.mrb[27].mxu0 }
 0x208   : > { %v3698_v43 = vmax.f32 %v3666_v35, 0.0  ;;  %v5132_v44 = vadd.f32 %v3574_v42, %v2025_v41 }
 0x209   : > { %3731 = vst [vmem:[%s6507_s9 + $0xc8] sm:$0xff] %v3699_v39  ;;  %v3669_v45 = vadd.f32 %v5131_v40, %v6501_v52 }
 0x20a   : > { %3730 = vst [vmem:[%s6507_s9 + $0xc0] sm:$0xff] %v3698_v43  ;;  %v3668_v46 = vadd.f32 %v5132_v44, %v6501_v52  ;;  %v4899_v47 = vpop.f32.mrb[28].mxu1  ;;  %v5099_v51 = vpop.f32.mrb[28].mxu0 }
 0x20b   : > { %v3701_v48 = vmax.f32 %v3669_v45, 0.0  ;;  %v5133_v53 = vadd.f32 %v5099_v51, %v4899_v47  ;;  %v2035_v54 = vpop.f32.mrb[29].mxu1  ;;  %v3584_v56 = vpop.f32.mrb[29].mxu0 }
 0x20c   : > { %v3700_v58 = vmax.f32 %v3668_v46, 0.0  ;;  %v5134_v59 = vadd.f32 %v3584_v56, %v2035_v54 }
 0x20d   : > { %3733 = vst [vmem:[%s6507_s9 + $0xd8] sm:$0xff] %v3701_v48  ;;  %v3671_v60 = vadd.f32 %v5133_v53, %v6501_v52 }
 0x20e   : > { %3732 = vst [vmem:[%s6507_s9 + $0xd0] sm:$0xff] %v3700_v58  ;;  %v3670_v49 = vadd.f32 %v5134_v59, %v6501_v52  ;;  %v4902_v62 = vpop.f32.mrb[30].mxu1  ;;  %v5102_v63 = vpop.f32.mrb[30].mxu0 }
 0x20f   : > { %v3703_v50 = vmax.f32 %v3671_v60, 0.0  ;;  %v5135_v0 = vadd.f32 %v5102_v63, %v4902_v62  ;;  %v2045_v2 = vpop.f32.mrb[31].mxu1  ;;  %v3594_v4 = vpop.f32.mrb[31].mxu0 }
 0x210   : > { %v3702_v5 = vmax.f32 %v3670_v49, 0.0  ;;  %v5136_v6 = vadd.f32 %v3594_v4, %v2045_v2 }
 0x211   : > { %3735 = vst [vmem:[%s6507_s9 + $0xe8] sm:$0xff] %v3703_v50  ;;  %v3673_v7 = vadd.f32 %v5135_v0, %v6501_v52 }
 0x212   : > { %3734 = vst [vmem:[%s6507_s9 + $0xe0] sm:$0xff] %v3702_v5  ;;  %v3672_v9 = vadd.f32 %v5136_v6, %v6501_v52 }
 0x213   : > { %v3705_v10 = vmax.f32 %v3673_v7, 0.0 }
 0x214   : > { %v3704_v55 = vmax.f32 %v3672_v9, 0.0 }
 0x215   : > { %3737 = vst [vmem:[%s6507_s9 + $0xf8] sm:$0xff] %v3705_v10 }
 0x216   : > { %3736 = vst [vmem:[%s6507_s9 + $0xf0] sm:$0xff] %v3704_v55 }
 0x217   : > { %5432 = shalt.err (!%p5429_p5)
}
 0x218   : > { %s5433_s29 = scalar_lea.hbm %s6578_s21, 4096  ;;  %s5437_s5 = scalar_lea.hbm %s6635_s3, 8192 }
 0x219   : > { %p5434_p6 = scmp.ne.s32.totalorder %s6578_s21, %s5433_s29  ;;  %p5438_p10 = scmp.lt.u32.totalorder %s6578_s21, %s6635_s3 }
 0x21a   : > { %p5439_p11 = scmp.lt.u32.totalorder %s5437_s5, %s5433_s29  ;;  %p5441_p13 = scmp.lt.u32.totalorder %s5433_s29, %s6578_s21 }
 0x21b   : > { %p5435_p7 = pnand %p5434_p6, %p5562_p4 }
 0x21c   : > { %p5440_p12 = por %p5439_p11, %p5438_p10 }
 0x21d   : > { %p5436_p9 = pneg %p5435_p7 }
 0x21e   : > { %p5442_p0 = por %p5441_p13, %p5440_p12 }
 0x220   : > { %p5443_p1 = pnand %p5442_p0, %p5436_p9 }
 0x222   : > { %5446 = shalt.err (!%p5443_p1)
}
 0x223   : > { %s5500_s8 = smov 128   ;;  %s5501_s9 = smov 8  }
 0x224   : > { %5362 = dma.vmem_to_hbm [thread:$0]  (%p5562_p4), %s6580_s11, 4096, %s6578_s21, %s6586_s15, %s5500_s8, %s5500_s8, %s5501_s9  }
 0x225 PF: > { %p5368_p2 = scmp.ge.s32.totalorder %s5497_s17, 2  ;;  %s3768_s10 = sand.u32 1, %s5477_s12  }
 0x226   : > { %s3769_s18 = scalar_lea.sflag [#allocation3], %s3768_s10 }
 0x227   : > { %p5365_p3 = pnand %p5368_p2, %p5569_p8 }
 0x229   : > { %5472 = dma.done.wait (!%p5365_p3), %s3769_s18, 4096  }
 0x22a   : > { %5474 = vsyncadd (!%p5365_p3), %s3769_s18, 4294963200  ;;  %s16_s17 = sadd.s32 1, %s5497_s17   ;;  %s6747_s12 = smov %s5481_s13 }
 0x22b   : > { %p13_p5 = scmp.ge.s32.totalorder %s16_s17, 4   ;;  %s6748_s13 = smov %s5485_s14 }
 0x22c   : > { %s6749_s14 = smov %s5575_s25  ;;  %s6750_s15 = smov %s5493_s16 }
 0x22d   : > { %s6751_s16 = smov %s6753_s20  ;;  %15 = sbr.rel (!%p13_p5) target bundleno = 4 (0x4), region = 83 }
 0x234   :  { %3774 = vsyncpa [#allocation3], 1 }
 0x235   :  { %3776 = vsyncpa [#allocation3 + $0x1], 1 }

</bundles_post_ra>
